<compile_context>
chip_gen: v5e
topology: v5e:2x2
jax: 0.10.0
libtpu: 0.0.40
codegen_flags: <defaults>
</compile_context>

<pallas_src>
import functools

import jax
import jax.numpy as jnp
from jax.experimental import pallas as pl
from jax.experimental.pallas import tpu as pltpu

EPS = 1e-5  # adaILN / InstanceNorm default eps


# --------------------------------------------------------------------------- #
# In-kernel helpers
# --------------------------------------------------------------------------- #
def _shift_flat(x, off):
    """Zero-filled shift along the flattened-spatial (lane) axis.

    out[:, p] = x[:, p + off] if 0 <= p + off < HW else 0.
    Static slices + concat (no pltpu.roll), so it lowers on Mosaic and in
    interpret mode alike.
    """
    if off == 0:
        return x
    c, hw = x.shape
    zeros = jnp.zeros((c, abs(off)), x.dtype)
    if off > 0:
        return jnp.concatenate([x[:, off:], zeros], axis=1)
    return jnp.concatenate([zeros, x[:, : hw + off]], axis=1)


def _col_masks(h, w, dtype):
    """Column-validity masks for dx = -1 / +1 (the zero-fill shift already
    zeroes the out-of-range rows)."""
    hw = h * w
    col = jax.lax.broadcasted_iota(jnp.int32, (1, hw), 1) % w
    return {-1: (col >= 1).astype(dtype), +1: (col <= w - 2).astype(dtype)}


def _conv3x3(x, w_ref, h, w, masks):
    """3x3 stride-1 pad-1 conv on a [Cin, HW] tile (x already in compute dtype).

    Taps are stacked along the contraction dim per kernel row (ky):
        acc = sum_ky  W[ky] @ concat_kx( shift(x, ky, kx) * col_mask(kx) )
    with W[ky] of shape [Cout, 3*Cin], so most of the accumulation happens on
    the MXU contraction instead of 8 full-tile VPU adds.  Returns f32 [Cout, HW].
    """
    acc = None
    for iy, dy in enumerate((-1, 0, 1)):
        pieces = []
        for dx in (-1, 0, 1):
            xs = _shift_flat(x, dy * w + dx)
            if dx != 0:
                xs = xs * masks[dx]
            pieces.append(xs)
        xg = jnp.concatenate(pieces, axis=0)                 # [3*Cin, HW]
        t = jnp.dot(w_ref[iy], xg, preferred_element_type=jnp.float32)
        acc = t if acc is None else acc + t
    return acc


def _adailn_affine(y, bias, rho, gamma, beta, eps):
    """Return (a, b) such that adaILN(y + bias) == a * y + b, per channel.

    One per-channel sum / sum-of-squares pass; IN stats come directly from it,
    LN stats from the channel aggregation (law of total moments).  Unbiased
    (ddof=1) divisors match torch.var as used by UGATIT's adaILN.  The conv
    bias is folded analytically; variances are clamped at 0 so rsqrt never
    sees a (cancellation-induced) negative value.
    """
    c, hw = y.shape
    n = c * hw
    s = jnp.sum(y, axis=1, keepdims=True)                    # [C, 1]
    q = jnp.sum(y * y, axis=1, keepdims=True)                # [C, 1]
    sb = s + hw * bias                                       # stats of (y + bias)
    qb = q + 2.0 * bias * s + hw * bias * bias

    mu_in = sb / hw
    var_in = jnp.maximum((qb - sb * sb / hw) / (hw - 1), 0.0)
    inv_in = jax.lax.rsqrt(var_in + eps)                     # [C, 1]

    s_l = jnp.sum(sb, axis=0, keepdims=True)                 # [1, 1]
    q_l = jnp.sum(qb, axis=0, keepdims=True)
    mu_ln = s_l / n
    var_ln = jnp.maximum((q_l - s_l * s_l / n) / (n - 1), 0.0)
    inv_ln = jax.lax.rsqrt(var_ln + eps)                     # [1, 1]

    a = gamma * (rho * inv_in + (1.0 - rho) * inv_ln)
    b = beta - gamma * (rho * mu_in * inv_in + (1.0 - rho) * mu_ln * inv_ln)
    return a, a * bias + b                                   # fold conv bias into intercept


def _resnet_block_kernel(x_ref, w1_ref, w2_ref, p_ref, o_ref, *,
                         h, w, eps, compute_dtype):
    p = p_ref[0]                                             # [C, 8] packed params
    b1, rho1 = p[:, 0:1], p[:, 1:2]
    b2, rho2 = p[:, 2:3], p[:, 3:4]
    gamma, beta = p[:, 4:5], p[:, 5:6]

    masks = _col_masks(h, w, compute_dtype)                  # shared by both convs

    # ---- stage 1: conv1 (+bias folded) + adaILN + ReLU; stays on-chip ----
    xc = x_ref[0].astype(compute_dtype)                      # cast hoisted out of tap loop
    y1 = _conv3x3(xc, w1_ref, h, w, masks)                   # f32 [C, HW]
    a1, c1 = _adailn_affine(y1, b1, rho1, gamma, beta, eps)
    y1 = jnp.maximum(a1 * y1 + c1, 0.0).astype(compute_dtype)  # compute-dtype activation

    # ---- stage 2: conv2 (+bias folded) + adaILN + residual add ----
    y2 = _conv3x3(y1, w2_ref, h, w, masks)                   # f32 [C, HW]
    a2, c2 = _adailn_affine(y2, b2, rho2, gamma, beta, eps)
    o_ref[0] = (a2 * y2 + c2 + x_ref[0]).astype(o_ref.dtype)


# --------------------------------------------------------------------------- #
# Wrapper
# --------------------------------------------------------------------------- #
def _conv_row_weights(wgt, compute_dtype):
    """[Cout, Cin, 3, 3] -> [3(ky), Cout, 3(kx)*Cin]; kx-major contraction
    blocks matching the in-kernel concat order."""
    cout, cin = wgt.shape[:2]
    return (jnp.transpose(wgt, (2, 0, 3, 1))                 # [ky, Cout, kx, Cin]
            .reshape(3, cout, 3 * cin).astype(compute_dtype))


def _pick_vmem_limit(c, hw, in_bytes, cd_bytes):
    """Per-chip scoped-VMEM budget: footprint estimate + headroom, capped at
    75% of physical VMEM (64 MiB fallback keeps v7x safe)."""
    tile = c * hw
    est = (4 * tile * in_bytes            # double-buffered x-in + out blocks
           + 4 * 9 * c * c * cd_bytes     # double-buffered conv1/conv2 weights
           + 2 * tile * 4                 # f32 conv accumulator + row-dot temp
           + 2 * tile * cd_bytes          # compute-dtype x copy / y1 activation
           + 3 * tile * cd_bytes          # stacked [3C, HW] operand
           + 2 * tile * 4                 # epilogue temporaries
           + (2 << 20))                   # params / misc
    est = int(est) * 3 // 2               # compiler-scratch headroom
    try:
        cap = int(pltpu.get_tpu_info().vmem_capacity_bytes)
    except Exception:                     # noqa: BLE001 - no TPU visible / older API
        cap = 64 << 20
    return max(32 << 20, min(est, cap * 3 // 4))


def resnet_block(x, w1, b1, rho1, w2, b2, rho2, gamma, beta,
                 eps=EPS, compute_dtype=jnp.bfloat16):
    """ResnetBlock.forward (adaptive=True, use_bias=True).  x: NCHW float32."""
    b, c, h, w = x.shape
    hw = h * w
    x_flat = x.reshape(b, c, hw)

    # Pack per-channel / per-sample scalars: (b1, rho1, b2, rho2, gamma, beta, 0, 0).
    params = jnp.stack([
        jnp.broadcast_to(b1, (b, c)), jnp.broadcast_to(rho1, (b, c)),
        jnp.broadcast_to(b2, (b, c)), jnp.broadcast_to(rho2, (b, c)),
        jnp.broadcast_to(gamma, (b, c)), jnp.broadcast_to(beta, (b, c)),
        jnp.zeros((b, c)), jnp.zeros((b, c)),
    ], axis=-1).astype(jnp.float32)                          # [B, C, 8]

    w1g = _conv_row_weights(w1, compute_dtype)               # [3, C, 3C]
    w2g = _conv_row_weights(w2, compute_dtype)

    in_bytes = x.dtype.itemsize
    cd_bytes = jnp.dtype(compute_dtype).itemsize
    cost = pl.CostEstimate(
        flops=int(b * 2 * (2 * 9 * c * c * hw) + b * 12 * c * hw),
        transcendentals=int(b * 2 * (c + 1)),
        bytes_accessed=int(2 * b * c * hw * in_bytes
                           + 2 * 9 * c * c * cd_bytes + b * c * 8 * 4),
    )

    kernel = functools.partial(_resnet_block_kernel, h=h, w=w, eps=eps,
                               compute_dtype=compute_dtype)
    out = pl.pallas_call(
        kernel,
        out_shape=jax.ShapeDtypeStruct((b, c, hw), x.dtype),
        grid=(b,),
        in_specs=[
            pl.BlockSpec((1, c, hw), lambda i: (i, 0, 0)),       # x (flattened spatial)
            pl.BlockSpec((3, c, 3 * c), lambda i: (0, 0, 0)),    # conv1 row-stacked weights
            pl.BlockSpec((3, c, 3 * c), lambda i: (0, 0, 0)),    # conv2 row-stacked weights
            pl.BlockSpec((1, c, 8), lambda i: (i, 0, 0)),        # packed params
        ],
        out_specs=pl.BlockSpec((1, c, hw), lambda i: (i, 0, 0)),
        compiler_params=pltpu.CompilerParams(
            dimension_semantics=("parallel",),                   # shard batch across TCs (v7x)
            vmem_limit_bytes=_pick_vmem_limit(c, hw, in_bytes, cd_bytes),
        ),
        cost_estimate=cost,
    )(x_flat, w1g, w2g, params)
    return out.reshape(b, c, h, w)


# --------------------------------------------------------------------------- #
# Pure-JAX reference (mirrors the PyTorch module, adaILN as in UGATIT)
# --------------------------------------------------------------------------- #
def _reference(x, w1, b1, rho1, w2, b2, rho2, gamma, beta, eps=EPS):
    def conv(z, wgt, bias):
        y = jax.lax.conv_general_dilated(
            z, wgt, window_strides=(1, 1), padding=((1, 1), (1, 1)),
            dimension_numbers=("NCHW", "OIHW", "NCHW"))
        return y + bias[None, :, None, None]

    def adailn(z, rho):
        in_mean = jnp.mean(z, axis=(2, 3), keepdims=True)
        in_var = jnp.var(z, axis=(2, 3), keepdims=True, ddof=1)
        out_in = (z - in_mean) / jnp.sqrt(in_var + eps)
        ln_mean = jnp.mean(z, axis=(1, 2, 3), keepdims=True)
        ln_var = jnp.var(z, axis=(1, 2, 3), keepdims=True, ddof=1)
        out_ln = (z - ln_mean) / jnp.sqrt(ln_var + eps)
        r = rho[None, :, None, None]
        out = r * out_in + (1.0 - r) * out_ln
        return out * gamma[:, :, None, None] + beta[:, :, None, None]

    out = jnp.maximum(adailn(conv(x, w1, b1), rho1), 0.0)
    out = adailn(conv(out, w2, b2), rho2)
    return out + x


if __name__ == "__main__":
    B, C, H, W = 2, 4, 16, 16  # dim = 4
    key = jax.random.PRNGKey(0)
    ks = jax.random.split(key, 8)

    x = jax.random.normal(ks[0], (B, C, H, W), jnp.float32)
    w1 = 0.1 * jax.random.normal(ks[1], (C, C, 3, 3), jnp.float32)
    b1 = 0.1 * jax.random.normal(ks[2], (C,), jnp.float32)
    w2 = 0.1 * jax.random.normal(ks[3], (C, C, 3, 3), jnp.float32)
    b2 = 0.1 * jax.random.normal(ks[4], (C,), jnp.float32)
    rho1 = jnp.full((C,), 0.9, jnp.float32)                  # adaILN rho init
    rho2 = jnp.full((C,), 0.9, jnp.float32)
    gamma = jax.random.normal(ks[5], (B, C), jnp.float32)    # per-sample (from FC in full model)
    beta = jax.random.normal(ks[6], (B, C), jnp.float32)

    ref = _reference(x, w1, b1, rho1, w2, b2, rho2, gamma, beta)

    # Exact-math path (f32 MXU operands): strict check against the PyTorch-equivalent reference.
    out_f32 = jax.block_until_ready(
        resnet_block(x, w1, b1, rho1, w2, b2, rho2, gamma, beta,
                     compute_dtype=jnp.float32))
    assert out_f32.shape == (B, C, H, W)
    err_f32 = float(jnp.max(jnp.abs(out_f32 - ref)))
    assert err_f32 < 2e-3, err_f32

    # Production path (bf16 MXU operands / activations, f32 accumulation): sanity check only.
    out_bf16 = jax.block_until_ready(
        resnet_block(x, w1, b1, rho1, w2, b2, rho2, gamma, beta))
    assert out_bf16.shape == (B, C, H, W)
    assert bool(jnp.all(jnp.isfinite(out_bf16)))
    assert float(jnp.max(jnp.abs(out_bf16 - ref))) < 0.5

    print("KERNEL_OK")
</pallas_src>

<mosaic_0001>
module attributes {stable_mosaic.version = 11 : i64} {
  func.func @_resnet_block_kernel(%arg0: i32, %arg1: memref<1x4x256xf32, #tpu.memory_space<vmem>>, %arg2: memref<3x4x12xf32, #tpu.memory_space<vmem>>, %arg3: memref<3x4x12xf32, #tpu.memory_space<vmem>>, %arg4: memref<1x4x8xf32, #tpu.memory_space<vmem>>, %arg5: memref<1x4x256xf32, #tpu.memory_space<vmem>>) attributes {dimension_semantics = [#tpu.dimension_semantics<parallel>], iteration_bounds = array<i64: 2>, scalar_prefetch = 0 : i64, scratch_operands = 0 : i64, tpu.core_type = #tpu.core_type<tc>, window_params = [{transform_indices = @transform_0, window_bounds = array<i64: 1, 4, 256>}, {pipeline_mode = #tpu.pipeline_mode<synchronous>, transform_indices = @transform_1, window_bounds = array<i64: 3, 4, 12>}, {pipeline_mode = #tpu.pipeline_mode<synchronous>, transform_indices = @transform_2, window_bounds = array<i64: 3, 4, 12>}, {transform_indices = @transform_3, window_bounds = array<i64: 1, 4, 8>}, {transform_indices = @transform_4, window_bounds = array<i64: 1, 4, 256>}]} {
    %c0 = arith.constant 0 : index
    %c0_0 = arith.constant 0 : index
    %c0_1 = arith.constant 0 : index
    %0 = vector.load %arg4[%c0, %c0_0, %c0_1] : memref<1x4x8xf32, #tpu.memory_space<vmem>>, vector<1x4x8xf32>
    %1 = vector.shape_cast %0 : vector<1x4x8xf32> to vector<4x8xf32>
    %2 = vector.extract_strided_slice %1 {offsets = [0, 0], sizes = [4, 1], strides = [1, 1]} : vector<4x8xf32> to vector<4x1xf32>
    %3 = vector.extract_strided_slice %1 {offsets = [0, 1], sizes = [4, 1], strides = [1, 1]} : vector<4x8xf32> to vector<4x1xf32>
    %4 = vector.extract_strided_slice %1 {offsets = [0, 2], sizes = [4, 1], strides = [1, 1]} : vector<4x8xf32> to vector<4x1xf32>
    %5 = vector.extract_strided_slice %1 {offsets = [0, 3], sizes = [4, 1], strides = [1, 1]} : vector<4x8xf32> to vector<4x1xf32>
    %6 = vector.extract_strided_slice %1 {offsets = [0, 4], sizes = [4, 1], strides = [1, 1]} : vector<4x8xf32> to vector<4x1xf32>
    %7 = vector.extract_strided_slice %1 {offsets = [0, 5], sizes = [4, 1], strides = [1, 1]} : vector<4x8xf32> to vector<4x1xf32>
    %8 = tpu.iota {dimensions = array<i32: 1>} : vector<1x256xi32>
    %c16_i32 = arith.constant 16 : i32
    %c0_i32 = arith.constant 0 : i32
    %9 = arith.cmpi eq, %c16_i32, %c0_i32 : i32
    %c1_i32 = arith.constant 1 : i32
    %10 = arith.select %9, %c1_i32, %c16_i32 : i32
    %11 = vector.broadcast %10 : i32 to vector<1x256xi32>
    %12 = arith.remsi %8, %11 : vector<1x256xi32>
    %c0_i32_2 = arith.constant 0 : i32
    %13 = vector.broadcast %c0_i32_2 : i32 to vector<1x256xi32>
    %14 = arith.cmpi ne, %12, %13 : vector<1x256xi32>
    %c0_i32_3 = arith.constant 0 : i32
    %15 = vector.broadcast %c0_i32_3 : i32 to vector<1x256xi32>
    %16 = arith.cmpi slt, %12, %15 : vector<1x256xi32>
    %c0_i32_4 = arith.constant 0 : i32
    %17 = arith.cmpi slt, %10, %c0_i32_4 : i32
    %18 = vector.broadcast %17 : i1 to vector<1x256xi1>
    %19 = vector.broadcast %18 : vector<1x256xi1> to vector<1x256xi1>
    %20 = arith.xori %16, %19 : vector<1x256xi1>
    %21 = arith.andi %20, %14 : vector<1x256xi1>
    %22 = vector.broadcast %10 : i32 to vector<1x256xi32>
    %23 = arith.addi %12, %22 : vector<1x256xi32>
    %24 = arith.select %21, %23, %12 : vector<1x256xi1>, vector<1x256xi32>
    %c1_i32_5 = arith.constant 1 : i32
    %25 = vector.broadcast %c1_i32_5 : i32 to vector<1x256xi32>
    %26 = arith.cmpi sge, %24, %25 : vector<1x256xi32>
    %27 = arith.extui %26 : vector<1x256xi1> to vector<1x256xi32>
    %28 = arith.sitofp %27 : vector<1x256xi32> to vector<1x256xf32>
    %c14_i32 = arith.constant 14 : i32
    %29 = vector.broadcast %c14_i32 : i32 to vector<1x256xi32>
    %30 = arith.cmpi sle, %24, %29 : vector<1x256xi32>
    %31 = arith.extui %30 : vector<1x256xi1> to vector<1x256xi32>
    %32 = arith.sitofp %31 : vector<1x256xi32> to vector<1x256xf32>
    %c0_6 = arith.constant 0 : index
    %c0_7 = arith.constant 0 : index
    %c0_8 = arith.constant 0 : index
    %33 = vector.load %arg1[%c0_6, %c0_7, %c0_8] : memref<1x4x256xf32, #tpu.memory_space<vmem>>, vector<1x4x256xf32>
    %34 = vector.shape_cast %33 : vector<1x4x256xf32> to vector<4x256xf32>
    %cst = arith.constant 0.000000e+00 : f32
    %35 = vector.broadcast %cst : f32 to vector<4x17xf32>
    %36 = vector.extract_strided_slice %34 {offsets = [0, 0], sizes = [4, 239], strides = [1, 1]} : vector<4x256xf32> to vector<4x239xf32>
    %37 = tpu.concatenate %35, %36 in 1 : vector<4x17xf32>, vector<4x239xf32> -> vector<4x256xf32>
    %38 = vector.broadcast %28 : vector<1x256xf32> to vector<4x256xf32>
    %39 = arith.mulf %37, %38 : vector<4x256xf32>
    %cst_9 = arith.constant 0.000000e+00 : f32
    %40 = vector.broadcast %cst_9 : f32 to vector<4x16xf32>
    %41 = vector.extract_strided_slice %34 {offsets = [0, 0], sizes = [4, 240], strides = [1, 1]} : vector<4x256xf32> to vector<4x240xf32>
    %42 = tpu.concatenate %40, %41 in 1 : vector<4x16xf32>, vector<4x240xf32> -> vector<4x256xf32>
    %cst_10 = arith.constant 0.000000e+00 : f32
    %43 = vector.broadcast %cst_10 : f32 to vector<4x15xf32>
    %44 = vector.extract_strided_slice %34 {offsets = [0, 0], sizes = [4, 241], strides = [1, 1]} : vector<4x256xf32> to vector<4x241xf32>
    %45 = tpu.concatenate %43, %44 in 1 : vector<4x15xf32>, vector<4x241xf32> -> vector<4x256xf32>
    %46 = vector.broadcast %32 : vector<1x256xf32> to vector<4x256xf32>
    %47 = arith.mulf %45, %46 : vector<4x256xf32>
    %48 = tpu.concatenate %39, %42, %47 in 0 : vector<4x256xf32>, vector<4x256xf32>, vector<4x256xf32> -> vector<12x256xf32>
    %c0_11 = arith.constant 0 : index
    %c0_12 = arith.constant 0 : index
    %c0_13 = arith.constant 0 : index
    %49 = vector.load %arg2[%c0_11, %c0_12, %c0_13] : memref<3x4x12xf32, #tpu.memory_space<vmem>>, vector<1x4x12xf32>
    %50 = vector.shape_cast %49 : vector<1x4x12xf32> to vector<4x12xf32>
    %cst_14 = arith.constant dense<0.000000e+00> : vector<4x256xf32>
    %51 = tpu.matmul %50, %48, %cst_14 {dimension_numbers = #tpu.dot_dimension_numbers<[1], [0], [0], [1], [0, 0, 1, 1], [], []>} : vector<4x12xf32>, vector<12x256xf32>, vector<4x256xf32> -> vector<4x256xf32>
    %cst_15 = arith.constant 0.000000e+00 : f32
    %52 = vector.broadcast %cst_15 : f32 to vector<4x1xf32>
    %53 = vector.extract_strided_slice %34 {offsets = [0, 0], sizes = [4, 255], strides = [1, 1]} : vector<4x256xf32> to vector<4x255xf32>
    %54 = tpu.concatenate %52, %53 in 1 : vector<4x1xf32>, vector<4x255xf32> -> vector<4x256xf32>
    %55 = vector.broadcast %28 : vector<1x256xf32> to vector<4x256xf32>
    %56 = arith.mulf %54, %55 : vector<4x256xf32>
    %cst_16 = arith.constant 0.000000e+00 : f32
    %57 = vector.broadcast %cst_16 : f32 to vector<4x1xf32>
    %58 = vector.extract_strided_slice %34 {offsets = [0, 1], sizes = [4, 255], strides = [1, 1]} : vector<4x256xf32> to vector<4x255xf32>
    %59 = tpu.concatenate %58, %57 in 1 : vector<4x255xf32>, vector<4x1xf32> -> vector<4x256xf32>
    %60 = vector.broadcast %32 : vector<1x256xf32> to vector<4x256xf32>
    %61 = arith.mulf %59, %60 : vector<4x256xf32>
    %62 = tpu.concatenate %56, %34, %61 in 0 : vector<4x256xf32>, vector<4x256xf32>, vector<4x256xf32> -> vector<12x256xf32>
    %c1 = arith.constant 1 : index
    %c0_17 = arith.constant 0 : index
    %c0_18 = arith.constant 0 : index
    %63 = vector.load %arg2[%c1, %c0_17, %c0_18] : memref<3x4x12xf32, #tpu.memory_space<vmem>>, vector<1x4x12xf32>
    %64 = vector.shape_cast %63 : vector<1x4x12xf32> to vector<4x12xf32>
    %cst_19 = arith.constant dense<0.000000e+00> : vector<4x256xf32>
    %65 = tpu.matmul %64, %62, %cst_19 {dimension_numbers = #tpu.dot_dimension_numbers<[1], [0], [0], [1], [0, 0, 1, 1], [], []>} : vector<4x12xf32>, vector<12x256xf32>, vector<4x256xf32> -> vector<4x256xf32>
    %66 = arith.addf %51, %65 : vector<4x256xf32>
    %cst_20 = arith.constant 0.000000e+00 : f32
    %67 = vector.broadcast %cst_20 : f32 to vector<4x15xf32>
    %68 = vector.extract_strided_slice %34 {offsets = [0, 15], sizes = [4, 241], strides = [1, 1]} : vector<4x256xf32> to vector<4x241xf32>
    %69 = tpu.concatenate %68, %67 in 1 : vector<4x241xf32>, vector<4x15xf32> -> vector<4x256xf32>
    %70 = vector.broadcast %28 : vector<1x256xf32> to vector<4x256xf32>
    %71 = arith.mulf %69, %70 : vector<4x256xf32>
    %cst_21 = arith.constant 0.000000e+00 : f32
    %72 = vector.broadcast %cst_21 : f32 to vector<4x16xf32>
    %73 = vector.extract_strided_slice %34 {offsets = [0, 16], sizes = [4, 240], strides = [1, 1]} : vector<4x256xf32> to vector<4x240xf32>
    %74 = tpu.concatenate %73, %72 in 1 : vector<4x240xf32>, vector<4x16xf32> -> vector<4x256xf32>
    %cst_22 = arith.constant 0.000000e+00 : f32
    %75 = vector.broadcast %cst_22 : f32 to vector<4x17xf32>
    %76 = vector.extract_strided_slice %34 {offsets = [0, 17], sizes = [4, 239], strides = [1, 1]} : vector<4x256xf32> to vector<4x239xf32>
    %77 = tpu.concatenate %76, %75 in 1 : vector<4x239xf32>, vector<4x17xf32> -> vector<4x256xf32>
    %78 = vector.broadcast %32 : vector<1x256xf32> to vector<4x256xf32>
    %79 = arith.mulf %77, %78 : vector<4x256xf32>
    %80 = tpu.concatenate %71, %74, %79 in 0 : vector<4x256xf32>, vector<4x256xf32>, vector<4x256xf32> -> vector<12x256xf32>
    %c2 = arith.constant 2 : index
    %c0_23 = arith.constant 0 : index
    %c0_24 = arith.constant 0 : index
    %81 = vector.load %arg2[%c2, %c0_23, %c0_24] : memref<3x4x12xf32, #tpu.memory_space<vmem>>, vector<1x4x12xf32>
    %82 = vector.shape_cast %81 : vector<1x4x12xf32> to vector<4x12xf32>
    %cst_25 = arith.constant dense<0.000000e+00> : vector<4x256xf32>
    %83 = tpu.matmul %82, %80, %cst_25 {dimension_numbers = #tpu.dot_dimension_numbers<[1], [0], [0], [1], [0, 0, 1, 1], [], []>} : vector<4x12xf32>, vector<12x256xf32>, vector<4x256xf32> -> vector<4x256xf32>
    %84 = arith.addf %66, %83 : vector<4x256xf32>
    %cst_26 = arith.constant dense<0.000000e+00> : vector<4xf32>
    %85 = vector.multi_reduction <add>, %84, %cst_26 [1] : vector<4x256xf32> to vector<4xf32>
    %86 = vector.shape_cast %85 : vector<4xf32> to vector<4x1xf32>
    %87 = arith.mulf %84, %84 : vector<4x256xf32>
    %cst_27 = arith.constant dense<0.000000e+00> : vector<4xf32>
    %88 = vector.multi_reduction <add>, %87, %cst_27 [1] : vector<4x256xf32> to vector<4xf32>
    %89 = vector.shape_cast %88 : vector<4xf32> to vector<4x1xf32>
    %cst_28 = arith.constant 2.560000e+02 : f32
    %90 = vector.broadcast %cst_28 : f32 to vector<4x1xf32>
    %91 = arith.mulf %90, %2 : vector<4x1xf32>
    %92 = arith.addf %86, %91 : vector<4x1xf32>
    %cst_29 = arith.constant 2.000000e+00 : f32
    %93 = vector.broadcast %cst_29 : f32 to vector<4x1xf32>
    %94 = arith.mulf %93, %2 : vector<4x1xf32>
    %95 = arith.mulf %94, %86 : vector<4x1xf32>
    %96 = arith.addf %89, %95 : vector<4x1xf32>
    %cst_30 = arith.constant 2.560000e+02 : f32
    %97 = vector.broadcast %cst_30 : f32 to vector<4x1xf32>
    %98 = arith.mulf %97, %2 : vector<4x1xf32>
    %99 = arith.mulf %98, %2 : vector<4x1xf32>
    %100 = arith.addf %96, %99 : vector<4x1xf32>
    %cst_31 = arith.constant 2.560000e+02 : f32
    %101 = vector.broadcast %cst_31 : f32 to vector<4x1xf32>
    %102 = arith.divf %92, %101 : vector<4x1xf32>
    %103 = arith.mulf %92, %92 : vector<4x1xf32>
    %cst_32 = arith.constant 2.560000e+02 : f32
    %104 = vector.broadcast %cst_32 : f32 to vector<4x1xf32>
    %105 = arith.divf %103, %104 : vector<4x1xf32>
    %106 = arith.subf %100, %105 : vector<4x1xf32>
    %cst_33 = arith.constant 2.550000e+02 : f32
    %107 = vector.broadcast %cst_33 : f32 to vector<4x1xf32>
    %108 = arith.divf %106, %107 : vector<4x1xf32>
    %cst_34 = arith.constant 0.000000e+00 : f32
    %109 = vector.broadcast %cst_34 : f32 to vector<4x1xf32>
    %110 = arith.maximumf %108, %109 : vector<4x1xf32>
    %cst_35 = arith.constant 9.99999974E-6 : f32
    %111 = vector.broadcast %cst_35 : f32 to vector<4x1xf32>
    %112 = arith.addf %110, %111 : vector<4x1xf32>
    %113 = math.rsqrt %112 : vector<4x1xf32>
    %cst_36 = arith.constant dense<0.000000e+00> : vector<1xf32>
    %114 = vector.multi_reduction <add>, %92, %cst_36 [0] : vector<4x1xf32> to vector<1xf32>
    %115 = vector.shape_cast %114 : vector<1xf32> to vector<1x1xf32>
    %cst_37 = arith.constant dense<0.000000e+00> : vector<1xf32>
    %116 = vector.multi_reduction <add>, %100, %cst_37 [0] : vector<4x1xf32> to vector<1xf32>
    %117 = vector.shape_cast %116 : vector<1xf32> to vector<1x1xf32>
    %cst_38 = arith.constant 1.024000e+03 : f32
    %118 = vector.broadcast %cst_38 : f32 to vector<1x1xf32>
    %119 = arith.divf %115, %118 : vector<1x1xf32>
    %120 = arith.mulf %115, %115 : vector<1x1xf32>
    %cst_39 = arith.constant 1.024000e+03 : f32
    %121 = vector.broadcast %cst_39 : f32 to vector<1x1xf32>
    %122 = arith.divf %120, %121 : vector<1x1xf32>
    %123 = arith.subf %117, %122 : vector<1x1xf32>
    %cst_40 = arith.constant 1.023000e+03 : f32
    %124 = vector.broadcast %cst_40 : f32 to vector<1x1xf32>
    %125 = arith.divf %123, %124 : vector<1x1xf32>
    %cst_41 = arith.constant 0.000000e+00 : f32
    %126 = vector.broadcast %cst_41 : f32 to vector<1x1xf32>
    %127 = arith.maximumf %125, %126 : vector<1x1xf32>
    %cst_42 = arith.constant 9.99999974E-6 : f32
    %128 = vector.broadcast %cst_42 : f32 to vector<1x1xf32>
    %129 = arith.addf %127, %128 : vector<1x1xf32>
    %130 = math.rsqrt %129 : vector<1x1xf32>
    %131 = arith.mulf %3, %113 : vector<4x1xf32>
    %cst_43 = arith.constant 1.000000e+00 : f32
    %132 = vector.broadcast %cst_43 : f32 to vector<4x1xf32>
    %133 = arith.subf %132, %3 : vector<4x1xf32>
    %134 = vector.broadcast %130 : vector<1x1xf32> to vector<4x1xf32>
    %135 = arith.mulf %133, %134 : vector<4x1xf32>
    %136 = arith.addf %131, %135 : vector<4x1xf32>
    %137 = arith.mulf %6, %136 : vector<4x1xf32>
    %138 = arith.mulf %3, %102 : vector<4x1xf32>
    %139 = arith.mulf %138, %113 : vector<4x1xf32>
    %cst_44 = arith.constant 1.000000e+00 : f32
    %140 = vector.broadcast %cst_44 : f32 to vector<4x1xf32>
    %141 = arith.subf %140, %3 : vector<4x1xf32>
    %142 = vector.broadcast %119 : vector<1x1xf32> to vector<4x1xf32>
    %143 = arith.mulf %141, %142 : vector<4x1xf32>
    %144 = vector.broadcast %130 : vector<1x1xf32> to vector<4x1xf32>
    %145 = arith.mulf %143, %144 : vector<4x1xf32>
    %146 = arith.addf %139, %145 : vector<4x1xf32>
    %147 = arith.mulf %6, %146 : vector<4x1xf32>
    %148 = arith.subf %7, %147 : vector<4x1xf32>
    %149 = arith.mulf %137, %2 : vector<4x1xf32>
    %150 = arith.addf %149, %148 : vector<4x1xf32>
    %151 = vector.broadcast %137 : vector<4x1xf32> to vector<4x256xf32>
    %152 = arith.mulf %151, %84 : vector<4x256xf32>
    %153 = vector.broadcast %150 : vector<4x1xf32> to vector<4x256xf32>
    %154 = arith.addf %152, %153 : vector<4x256xf32>
    %cst_45 = arith.constant 0.000000e+00 : f32
    %155 = vector.broadcast %cst_45 : f32 to vector<4x256xf32>
    %156 = arith.maximumf %154, %155 : vector<4x256xf32>
    %cst_46 = arith.constant 0.000000e+00 : f32
    %157 = vector.broadcast %cst_46 : f32 to vector<4x17xf32>
    %158 = vector.extract_strided_slice %156 {offsets = [0, 0], sizes = [4, 239], strides = [1, 1]} : vector<4x256xf32> to vector<4x239xf32>
    %159 = tpu.concatenate %157, %158 in 1 : vector<4x17xf32>, vector<4x239xf32> -> vector<4x256xf32>
    %160 = vector.broadcast %28 : vector<1x256xf32> to vector<4x256xf32>
    %161 = arith.mulf %159, %160 : vector<4x256xf32>
    %cst_47 = arith.constant 0.000000e+00 : f32
    %162 = vector.broadcast %cst_47 : f32 to vector<4x16xf32>
    %163 = vector.extract_strided_slice %156 {offsets = [0, 0], sizes = [4, 240], strides = [1, 1]} : vector<4x256xf32> to vector<4x240xf32>
    %164 = tpu.concatenate %162, %163 in 1 : vector<4x16xf32>, vector<4x240xf32> -> vector<4x256xf32>
    %cst_48 = arith.constant 0.000000e+00 : f32
    %165 = vector.broadcast %cst_48 : f32 to vector<4x15xf32>
    %166 = vector.extract_strided_slice %156 {offsets = [0, 0], sizes = [4, 241], strides = [1, 1]} : vector<4x256xf32> to vector<4x241xf32>
    %167 = tpu.concatenate %165, %166 in 1 : vector<4x15xf32>, vector<4x241xf32> -> vector<4x256xf32>
    %168 = vector.broadcast %32 : vector<1x256xf32> to vector<4x256xf32>
    %169 = arith.mulf %167, %168 : vector<4x256xf32>
    %170 = tpu.concatenate %161, %164, %169 in 0 : vector<4x256xf32>, vector<4x256xf32>, vector<4x256xf32> -> vector<12x256xf32>
    %c0_49 = arith.constant 0 : index
    %c0_50 = arith.constant 0 : index
    %c0_51 = arith.constant 0 : index
    %171 = vector.load %arg3[%c0_49, %c0_50, %c0_51] : memref<3x4x12xf32, #tpu.memory_space<vmem>>, vector<1x4x12xf32>
    %172 = vector.shape_cast %171 : vector<1x4x12xf32> to vector<4x12xf32>
    %cst_52 = arith.constant dense<0.000000e+00> : vector<4x256xf32>
    %173 = tpu.matmul %172, %170, %cst_52 {dimension_numbers = #tpu.dot_dimension_numbers<[1], [0], [0], [1], [0, 0, 1, 1], [], []>} : vector<4x12xf32>, vector<12x256xf32>, vector<4x256xf32> -> vector<4x256xf32>
    %cst_53 = arith.constant 0.000000e+00 : f32
    %174 = vector.broadcast %cst_53 : f32 to vector<4x1xf32>
    %175 = vector.extract_strided_slice %156 {offsets = [0, 0], sizes = [4, 255], strides = [1, 1]} : vector<4x256xf32> to vector<4x255xf32>
    %176 = tpu.concatenate %174, %175 in 1 : vector<4x1xf32>, vector<4x255xf32> -> vector<4x256xf32>
    %177 = vector.broadcast %28 : vector<1x256xf32> to vector<4x256xf32>
    %178 = arith.mulf %176, %177 : vector<4x256xf32>
    %cst_54 = arith.constant 0.000000e+00 : f32
    %179 = vector.broadcast %cst_54 : f32 to vector<4x1xf32>
    %180 = vector.extract_strided_slice %156 {offsets = [0, 1], sizes = [4, 255], strides = [1, 1]} : vector<4x256xf32> to vector<4x255xf32>
    %181 = tpu.concatenate %180, %179 in 1 : vector<4x255xf32>, vector<4x1xf32> -> vector<4x256xf32>
    %182 = vector.broadcast %32 : vector<1x256xf32> to vector<4x256xf32>
    %183 = arith.mulf %181, %182 : vector<4x256xf32>
    %184 = tpu.concatenate %178, %156, %183 in 0 : vector<4x256xf32>, vector<4x256xf32>, vector<4x256xf32> -> vector<12x256xf32>
    %c1_55 = arith.constant 1 : index
    %c0_56 = arith.constant 0 : index
    %c0_57 = arith.constant 0 : index
    %185 = vector.load %arg3[%c1_55, %c0_56, %c0_57] : memref<3x4x12xf32, #tpu.memory_space<vmem>>, vector<1x4x12xf32>
    %186 = vector.shape_cast %185 : vector<1x4x12xf32> to vector<4x12xf32>
    %cst_58 = arith.constant dense<0.000000e+00> : vector<4x256xf32>
    %187 = tpu.matmul %186, %184, %cst_58 {dimension_numbers = #tpu.dot_dimension_numbers<[1], [0], [0], [1], [0, 0, 1, 1], [], []>} : vector<4x12xf32>, vector<12x256xf32>, vector<4x256xf32> -> vector<4x256xf32>
    %188 = arith.addf %173, %187 : vector<4x256xf32>
    %cst_59 = arith.constant 0.000000e+00 : f32
    %189 = vector.broadcast %cst_59 : f32 to vector<4x15xf32>
    %190 = vector.extract_strided_slice %156 {offsets = [0, 15], sizes = [4, 241], strides = [1, 1]} : vector<4x256xf32> to vector<4x241xf32>
    %191 = tpu.concatenate %190, %189 in 1 : vector<4x241xf32>, vector<4x15xf32> -> vector<4x256xf32>
    %192 = vector.broadcast %28 : vector<1x256xf32> to vector<4x256xf32>
    %193 = arith.mulf %191, %192 : vector<4x256xf32>
    %cst_60 = arith.constant 0.000000e+00 : f32
    %194 = vector.broadcast %cst_60 : f32 to vector<4x16xf32>
    %195 = vector.extract_strided_slice %156 {offsets = [0, 16], sizes = [4, 240], strides = [1, 1]} : vector<4x256xf32> to vector<4x240xf32>
    %196 = tpu.concatenate %195, %194 in 1 : vector<4x240xf32>, vector<4x16xf32> -> vector<4x256xf32>
    %cst_61 = arith.constant 0.000000e+00 : f32
    %197 = vector.broadcast %cst_61 : f32 to vector<4x17xf32>
    %198 = vector.extract_strided_slice %156 {offsets = [0, 17], sizes = [4, 239], strides = [1, 1]} : vector<4x256xf32> to vector<4x239xf32>
    %199 = tpu.concatenate %198, %197 in 1 : vector<4x239xf32>, vector<4x17xf32> -> vector<4x256xf32>
    %200 = vector.broadcast %32 : vector<1x256xf32> to vector<4x256xf32>
    %201 = arith.mulf %199, %200 : vector<4x256xf32>
    %202 = tpu.concatenate %193, %196, %201 in 0 : vector<4x256xf32>, vector<4x256xf32>, vector<4x256xf32> -> vector<12x256xf32>
    %c2_62 = arith.constant 2 : index
    %c0_63 = arith.constant 0 : index
    %c0_64 = arith.constant 0 : index
    %203 = vector.load %arg3[%c2_62, %c0_63, %c0_64] : memref<3x4x12xf32, #tpu.memory_space<vmem>>, vector<1x4x12xf32>
    %204 = vector.shape_cast %203 : vector<1x4x12xf32> to vector<4x12xf32>
    %cst_65 = arith.constant dense<0.000000e+00> : vector<4x256xf32>
    %205 = tpu.matmul %204, %202, %cst_65 {dimension_numbers = #tpu.dot_dimension_numbers<[1], [0], [0], [1], [0, 0, 1, 1], [], []>} : vector<4x12xf32>, vector<12x256xf32>, vector<4x256xf32> -> vector<4x256xf32>
    %206 = arith.addf %188, %205 : vector<4x256xf32>
    %cst_66 = arith.constant dense<0.000000e+00> : vector<4xf32>
    %207 = vector.multi_reduction <add>, %206, %cst_66 [1] : vector<4x256xf32> to vector<4xf32>
    %208 = vector.shape_cast %207 : vector<4xf32> to vector<4x1xf32>
    %209 = arith.mulf %206, %206 : vector<4x256xf32>
    %cst_67 = arith.constant dense<0.000000e+00> : vector<4xf32>
    %210 = vector.multi_reduction <add>, %209, %cst_67 [1] : vector<4x256xf32> to vector<4xf32>
    %211 = vector.shape_cast %210 : vector<4xf32> to vector<4x1xf32>
    %cst_68 = arith.constant 2.560000e+02 : f32
    %212 = vector.broadcast %cst_68 : f32 to vector<4x1xf32>
    %213 = arith.mulf %212, %4 : vector<4x1xf32>
    %214 = arith.addf %208, %213 : vector<4x1xf32>
    %cst_69 = arith.constant 2.000000e+00 : f32
    %215 = vector.broadcast %cst_69 : f32 to vector<4x1xf32>
    %216 = arith.mulf %215, %4 : vector<4x1xf32>
    %217 = arith.mulf %216, %208 : vector<4x1xf32>
    %218 = arith.addf %211, %217 : vector<4x1xf32>
    %cst_70 = arith.constant 2.560000e+02 : f32
    %219 = vector.broadcast %cst_70 : f32 to vector<4x1xf32>
    %220 = arith.mulf %219, %4 : vector<4x1xf32>
    %221 = arith.mulf %220, %4 : vector<4x1xf32>
    %222 = arith.addf %218, %221 : vector<4x1xf32>
    %cst_71 = arith.constant 2.560000e+02 : f32
    %223 = vector.broadcast %cst_71 : f32 to vector<4x1xf32>
    %224 = arith.divf %214, %223 : vector<4x1xf32>
    %225 = arith.mulf %214, %214 : vector<4x1xf32>
    %cst_72 = arith.constant 2.560000e+02 : f32
    %226 = vector.broadcast %cst_72 : f32 to vector<4x1xf32>
    %227 = arith.divf %225, %226 : vector<4x1xf32>
    %228 = arith.subf %222, %227 : vector<4x1xf32>
    %cst_73 = arith.constant 2.550000e+02 : f32
    %229 = vector.broadcast %cst_73 : f32 to vector<4x1xf32>
    %230 = arith.divf %228, %229 : vector<4x1xf32>
    %cst_74 = arith.constant 0.000000e+00 : f32
    %231 = vector.broadcast %cst_74 : f32 to vector<4x1xf32>
    %232 = arith.maximumf %230, %231 : vector<4x1xf32>
    %cst_75 = arith.constant 9.99999974E-6 : f32
    %233 = vector.broadcast %cst_75 : f32 to vector<4x1xf32>
    %234 = arith.addf %232, %233 : vector<4x1xf32>
    %235 = math.rsqrt %234 : vector<4x1xf32>
    %cst_76 = arith.constant dense<0.000000e+00> : vector<1xf32>
    %236 = vector.multi_reduction <add>, %214, %cst_76 [0] : vector<4x1xf32> to vector<1xf32>
    %237 = vector.shape_cast %236 : vector<1xf32> to vector<1x1xf32>
    %cst_77 = arith.constant dense<0.000000e+00> : vector<1xf32>
    %238 = vector.multi_reduction <add>, %222, %cst_77 [0] : vector<4x1xf32> to vector<1xf32>
    %239 = vector.shape_cast %238 : vector<1xf32> to vector<1x1xf32>
    %cst_78 = arith.constant 1.024000e+03 : f32
    %240 = vector.broadcast %cst_78 : f32 to vector<1x1xf32>
    %241 = arith.divf %237, %240 : vector<1x1xf32>
    %242 = arith.mulf %237, %237 : vector<1x1xf32>
    %cst_79 = arith.constant 1.024000e+03 : f32
    %243 = vector.broadcast %cst_79 : f32 to vector<1x1xf32>
    %244 = arith.divf %242, %243 : vector<1x1xf32>
    %245 = arith.subf %239, %244 : vector<1x1xf32>
    %cst_80 = arith.constant 1.023000e+03 : f32
    %246 = vector.broadcast %cst_80 : f32 to vector<1x1xf32>
    %247 = arith.divf %245, %246 : vector<1x1xf32>
    %cst_81 = arith.constant 0.000000e+00 : f32
    %248 = vector.broadcast %cst_81 : f32 to vector<1x1xf32>
    %249 = arith.maximumf %247, %248 : vector<1x1xf32>
    %cst_82 = arith.constant 9.99999974E-6 : f32
    %250 = vector.broadcast %cst_82 : f32 to vector<1x1xf32>
    %251 = arith.addf %249, %250 : vector<1x1xf32>
    %252 = math.rsqrt %251 : vector<1x1xf32>
    %253 = arith.mulf %5, %235 : vector<4x1xf32>
    %cst_83 = arith.constant 1.000000e+00 : f32
    %254 = vector.broadcast %cst_83 : f32 to vector<4x1xf32>
    %255 = arith.subf %254, %5 : vector<4x1xf32>
    %256 = vector.broadcast %252 : vector<1x1xf32> to vector<4x1xf32>
    %257 = arith.mulf %255, %256 : vector<4x1xf32>
    %258 = arith.addf %253, %257 : vector<4x1xf32>
    %259 = arith.mulf %6, %258 : vector<4x1xf32>
    %260 = arith.mulf %5, %224 : vector<4x1xf32>
    %261 = arith.mulf %260, %235 : vector<4x1xf32>
    %cst_84 = arith.constant 1.000000e+00 : f32
    %262 = vector.broadcast %cst_84 : f32 to vector<4x1xf32>
    %263 = arith.subf %262, %5 : vector<4x1xf32>
    %264 = vector.broadcast %241 : vector<1x1xf32> to vector<4x1xf32>
    %265 = arith.mulf %263, %264 : vector<4x1xf32>
    %266 = vector.broadcast %252 : vector<1x1xf32> to vector<4x1xf32>
    %267 = arith.mulf %265, %266 : vector<4x1xf32>
    %268 = arith.addf %261, %267 : vector<4x1xf32>
    %269 = arith.mulf %6, %268 : vector<4x1xf32>
    %270 = arith.subf %7, %269 : vector<4x1xf32>
    %271 = arith.mulf %259, %4 : vector<4x1xf32>
    %272 = arith.addf %271, %270 : vector<4x1xf32>
    %273 = vector.broadcast %259 : vector<4x1xf32> to vector<4x256xf32>
    %274 = arith.mulf %273, %206 : vector<4x256xf32>
    %275 = vector.broadcast %272 : vector<4x1xf32> to vector<4x256xf32>
    %276 = arith.addf %274, %275 : vector<4x256xf32>
    %c0_85 = arith.constant 0 : index
    %c0_86 = arith.constant 0 : index
    %c0_87 = arith.constant 0 : index
    %277 = vector.load %arg1[%c0_85, %c0_86, %c0_87] : memref<1x4x256xf32, #tpu.memory_space<vmem>>, vector<1x4x256xf32>
    %278 = vector.shape_cast %277 : vector<1x4x256xf32> to vector<4x256xf32>
    %279 = arith.addf %276, %278 : vector<4x256xf32>
    %c0_88 = arith.constant 0 : index
    %c0_89 = arith.constant 0 : index
    %c0_90 = arith.constant 0 : index
    %280 = vector.load %arg5[%c0_88, %c0_89, %c0_90] : memref<1x4x256xf32, #tpu.memory_space<vmem>>, vector<1x4x256xf32>
    %281 = vector.shape_cast %280 : vector<1x4x256xf32> to vector<4x256xf32>
    %282 = vector.shape_cast %279 : vector<4x256xf32> to vector<1x4x256xf32>
    tpu.vector_store %arg5[%c0_88, %c0_89, %c0_90], %282 {strides = array<i32>} : memref<1x4x256xf32, #tpu.memory_space<vmem>>, vector<1x4x256xf32>,
    return
  }
  func.func @transform_0(%arg0: i32) -> (i32, i32, i32) {
    %c0_i32 = arith.constant 0 : i32
    %c0_i32_0 = arith.constant 0 : i32
    %c0_i32_1 = arith.constant 0 : i32
    return %arg0, %c0_i32, %c0_i32_0 : i32, i32, i32
  }
  func.func @transform_1(%arg0: i32) -> (i32, i32, i32) {
    %c0_i32 = arith.constant 0 : i32
    %c0_i32_0 = arith.constant 0 : i32
    %c0_i32_1 = arith.constant 0 : i32
    %c0_i32_2 = arith.constant 0 : i32
    return %c0_i32, %c0_i32_0, %c0_i32_1 : i32, i32, i32
  }
  func.func @transform_2(%arg0: i32) -> (i32, i32, i32) {
    %c0_i32 = arith.constant 0 : i32
    %c0_i32_0 = arith.constant 0 : i32
    %c0_i32_1 = arith.constant 0 : i32
    %c0_i32_2 = arith.constant 0 : i32
    return %c0_i32, %c0_i32_0, %c0_i32_1 : i32, i32, i32
  }
  func.func @transform_3(%arg0: i32) -> (i32, i32, i32) {
    %c0_i32 = arith.constant 0 : i32
    %c0_i32_0 = arith.constant 0 : i32
    %c0_i32_1 = arith.constant 0 : i32
    return %arg0, %c0_i32, %c0_i32_0 : i32, i32, i32
  }
  func.func @transform_4(%arg0: i32) -> (i32, i32, i32) {
    %c0_i32 = arith.constant 0 : i32
    %c0_i32_0 = arith.constant 0 : i32
    %c0_i32_1 = arith.constant 0 : i32
    return %arg0, %c0_i32, %c0_i32_0 : i32, i32, i32
  }
}

</mosaic_0001>

<bundles_post_ra>
// kernel: tpu_custom_call.1
= control target key start
LH: loop header
LB: loop body
LE: loop exit
PB: predicated region body
PF: predicated region fallthrough
CT: control target
= control target key end

     0   :  { %s2140_s0 = inlined_call_operand.hbm [shape: f32[2,4,256], index: 0, kind: input, shape index: {}]   ;;  %s2141_s1 = inlined_call_operand.hbm [shape: f32[3,4,12], index: 1, kind: input, shape index: {}]   ;;  %s2142_s2 = inlined_call_operand.hbm [shape: f32[3,4,12], index: 2, kind: input, shape index: {}]   ;;  %s2143_s3 = inlined_call_operand.hbm [shape: f32[2,4,8], index: 3, kind: input, shape index: {}]   ;;  %s2144_s4 = inlined_call_operand.hbm [shape: f32[2,4,256], index: 4, kind: output, shape index: {}]  }
   0x1   :  { %2145 = sst [smem:[#allocation15_spill]] %s2141_s1 }
   0x2   :  { %2146 = sst [smem:[#allocation16_spill]] %s2142_s2 }
   0x3   :  { %9 = vsyncpa [#allocation3], 0 }
   0x4   :  { %11 = vsyncpa [#allocation3 + $0x1], 0 }
   0x5   :  { %12 = vsyncpa [#allocation6], 0 }
   0x6   :  { %13 = vsyncpa [#allocation9], 0 }
   0x7   :  { %15 = vsyncpa [#allocation9 + $0x1], 0 }
   0x8   :  { %16 = vsyncpa [#allocation4], 0 }
   0x9   :  { %18 = vsyncpa [#allocation4 + $0x1], 0  ;;  %s1718_s15 = smov 0   ;;  %s1720_s16 = smov 0  }
   0xa   :  { %s1722_s17 = smov 0   ;;  %s1724_s18 = smov 0  }
   0xb LB: > { %s2147_s1 = sld [smem:[#allocation15_spill]]  ;;  %s1742_s22 = sadd.s32 4294967295, %s1670_s18   ;;  %s1670_s18 = sphi %s1724_s18, %s2159_s18   ;;  %s1666_s17 = sphi %s1722_s17, %s2158_s17   ;;  %s1662_s16 = sphi %s1720_s16, %s2157_s16   ;;  %s1658_s15 = sphi %s1718_s15, %s2156_s15  }
   0xc   : > { %p1296_p0 = scmp.ge.s32.totalorder %s1670_s18, 1  ;;  %p45_p1 = scmp.eq.s32.totalorder %s1742_s22, 0 }
   0xd   : > { %p149_p2 = scmp.lt.s32.totalorder %s1670_s18, 3  ;;  %s1672_s24 = smov [#allocation5]  }
   0xe   : > { %s162_s25 = sshll.u32 %s1672_s24, 4  ;;  %s2149_s2 = sld [smem:[#allocation16_spill]]  ;;  %s163_s25 = int_to_ptr.vmem [resolvable:$true] %s162_s25 }
   0xf   : > { %p1747_p3 = pnand %p1296_p0, %p149_p2  ;;  %s1673_s29 = smov [#allocation7]  }
  0x10   : > { %s176_s30 = sshll.u32 %s1673_s29, 4  ;;  %s1674_s5 = smov 64   ;;  %s177_s30 = int_to_ptr.vmem [resolvable:$true] %s176_s30 }
  0x11   : > { %s160_s21 = sshll.u32 %s2147_s1, 4  ;;  %p1360_p4 = pneg %p1747_p3  ;;  %s161_s21 = int_to_ptr.hbm [resolvable:$true] %s160_s21 }
  0x12   : > { %s1675_s6 = smov 4   ;;  %s1295_s7 = sadd.s32 4294967294, %s1670_s18  }
  0x13   : > { %p1361_p6 = pnand %p1360_p4, %p45_p1  ;;  %s1761_s8 = sadd.s32 1, %s1670_s18  }
  0x14   : > { %s174_s28 = sshll.u32 %s2149_s2, 4  ;;  %s28_s9 = ssub.s32 %s1670_s18, %s1761_s8  ;;  %s175_s28 = int_to_ptr.hbm [resolvable:$true] %s174_s28 }
  0x15   : > { %1363 = dma.hbm_to_vmem [thread:$0]  (!%p1361_p6), %s161_s21, 192, %s163_s25, [#allocation6], %s1674_s5, %s1674_s5, %s1675_s6  }
  0x16   : > { %1366 = dma.hbm_to_vmem [thread:$0]  (!%p1361_p6), %s175_s28, 192, %s177_s30, [#allocation6], %s1674_s5, %s1674_s5, %s1675_s6  }
  0x17   : > { %s31_s10 = sadd.s32 1, %s1666_s17  ;;  %p29_p7 = scmp.eq.s32.totalorder %s28_s9, 0 }
  0x18   : > { %p38_p8 = scmp.ne.s32.totalorder %s1666_s17, %s1662_s16  ;;  %p39_p9 = scmp.eq.s32.totalorder %s1670_s18, 0 }
  0x19   : > { %p44_p10 = scmp.ne.s32.totalorder %s1662_s16, %s1658_s15  ;;  %p136_p13 = scmp.eq.s32.totalorder %s1742_s22, 1 }
  0x1a   : > { %s1772_s11 = scalar_select %p29_p7, %s1666_s17, %s31_s10  }
  0x1b   : > { %p1774_p11 = por %p39_p9, %p38_p8  ;;  %p1780_p12 = por %p45_p1, %p44_p10 }
  0x1c   : > { %p142_p0 = scmp.eq.s32.totalorder %s1295_s7, 1  ;;  %p1380_p2 = scmp.lt.s32.totalorder %s1670_s18, 2 }
  0x1d   : > { %s1787_s14 = sand.u32 1, %s1666_s17   ;;  %p1789_p4 = por %p136_p13, %p38_p8 }
  0x1e   : > { %p1793_p6 = por %p142_p0, %p44_p10  ;;  %s1300_s21 = sshll.u32 %s1787_s14, 3 }
  0x1f   : > { %s1344_s24 = sshll.u32 %s1670_s18, 3  ;;  %s194_s28 = scalar_lea.vmem [#allocation2], %s1300_s21 }
  0x20   : > { %s199_s27 = scalar_lea.hbm %s2140_s0, %s1344_s24  ;;  %s203_s29 = sshll.u32 %s194_s28, 4  ;;  %s204_s29 = int_to_ptr.vmem [resolvable:$true] %s203_s29 }
  0x21   : > { %s201_s30 = sshll.u32 %s199_s27, 4  ;;  %p1804_p7 = pnand %p1380_p2, %p1774_p11  ;;  %s202_s30 = int_to_ptr.hbm [resolvable:$true] %s201_s30 }
  0x22   : > { %s1303_s6 = sshll.u32 %s1787_s14, 2  ;;  %s191_s7 = scalar_lea.sflag [#allocation3], %s1787_s14 }
  0x23   : > { %s1536_s9 = sshra.s32 %s202_s30, 4  ;;  %p1540_p9 = pneg %p1804_p7  ;;  %s1537_s9 = int_to_ptr.hbm [resolvable:$true] %s1536_s9 }
  0x24   : > { %s1538_s10 = scalar_lea.hbm %s1537_s9, 8  ;;  %s1543_s24 = scalar_lea.hbm %s2140_s0, 16 }
  0x25   : > { %p1539_p8 = scmp.ne.s32.totalorder %s1537_s9, %s1538_s10  ;;  %p1544_p11 = scmp.lt.s32.totalorder %s1537_s9, %s2140_s0 }
  0x26   : > { %p1545_p0 = scmp.lt.s32.totalorder %s1543_s24, %s1538_s10 }
  0x27   : > { %p1541_p10 = pnand %p1540_p9, %p1539_p8 }
  0x28   : > { %p1546_p2 = por %p1545_p0, %p1544_p11 }
  0x29   : > { %p1542_p13 = pneg %p1541_p10 }
  0x2b   : > { %p1547_p5 = pnand %p1546_p2, %p1542_p13 }
  0x2d   : > { %1550 = shalt.err (!%p1547_p5)
}
  0x2e   : > { %1370 = dma.hbm_to_vmem [thread:$0]  (!%p1804_p7), %s202_s30, 128, %s204_s29, %s191_s7  }
  0x2f   : > { %s1304_s27 = sshll.u32 %s1670_s18, 2  ;;  %s214_s28 = scalar_lea.vmem [#allocation8], %s1303_s6 }
  0x30   : > { %s222_s1 = sshll.u32 %s214_s28, 4  ;;  %s218_s12 = scalar_lea.hbm %s2143_s3, %s1304_s27  ;;  %s223_s1 = int_to_ptr.vmem [resolvable:$true] %s222_s1 }
  0x31   : > { %s220_s25 = sshll.u32 %s218_s12, 4  ;;  %s211_s9 = scalar_lea.sflag [#allocation9], %s1787_s14  ;;  %s221_s25 = int_to_ptr.hbm [resolvable:$true] %s220_s25 }
  0x32   : > { %s1566_s10 = sshra.s32 %s221_s25, 4  ;;  %s1573_s6 = scalar_lea.hbm %s2143_s3, 8  ;;  %s1567_s10 = int_to_ptr.hbm [resolvable:$true] %s1566_s10 }
  0x33   : > { %s1568_s24 = scalar_lea.hbm %s1567_s10, 4  ;;  %p1574_p13 = scmp.lt.s32.totalorder %s1567_s10, %s2143_s3 }
  0x34   : > { %p1569_p5 = scmp.ne.s32.totalorder %s1567_s10, %s1568_s24  ;;  %p1575_p11 = scmp.lt.s32.totalorder %s1573_s6, %s1568_s24 }
  0x36   : > { %p1571_p8 = pnand %p1569_p5, %p1540_p9  ;;  %p1576_p0 = por %p1575_p11, %p1574_p13 }
  0x38   : > { %p1572_p10 = pneg %p1571_p8 }
  0x3a   : > { %p1577_p2 = pnand %p1576_p0, %p1572_p10 }
  0x3c   : > { %1580 = shalt.err (!%p1577_p2)
}
  0x3d   : > { %1373 = dma.hbm_to_vmem [thread:$0]  (!%p1804_p7), %s221_s25, 64, %s223_s1, %s211_s9  }
  0x3e   : > { %231 = sbr.rel (%p1747_p3) target bundleno = 2104 (0x838), region = 36  ;;  %s1842_s2 = sand.u32 (!%p1747_p3), 1, %s1662_s16  }
  0x3f   : > { %s1306_s14 = sshll.u32 (!%p1747_p3), %s1842_s2, 3  ;;  %s234_s27 = scalar_lea.sflag (!%p1747_p3), [#allocation3], %s1842_s2 }
  0x40   : > { %s237_s28 = scalar_lea.vmem (!%p1747_p3), [#allocation2], %s1306_s14 }
  0x43   : > { %1641 = dma.done.wait (%p1780_p12), %s234_s27, 128  }
  0x44   : > { %1643 = vsyncadd (%p1780_p12), %s234_s27, 4294967168 }
  0x45   : > { %1645 = dma.done.wait (%p45_p1), [#allocation6], 384  }
  0x46   : > { %1647 = vsyncadd (%p45_p1), [#allocation6], 4294966912  ;;  %s1309_s1 = sshll.u32 %s1842_s2, 2  ;;  %s254_s23 = scalar_lea.sflag [#allocation9], %s1842_s2 }
  0x47   : > { %s1858_s5 = scalar_lea.vmem [#allocation8], %s1309_s1 }
  0x48   : > { %1649 = dma.done.wait (%p1780_p12), %s254_s23, 64  }
  0x49   : > { %1651 = vsyncadd (%p1780_p12), %s254_s23, 4294967232  ;;  %v328_v0 = vld [vmem:[%s237_s28] sm:$0xff]  ;;  %s1676_s21 = smov 17   ;;  %s1677_s12 = smov 16   ;;  %v289_v21 = vlaneseq  ;;  %vm337_vm0 = vcmask 138240   ;;  %vm351_vm1 = vcmask 130048  }
  0x4a   : > { %330 = vst [vmem:[#allocation1] ss:$2 sm:$0xff] %v328_v0  ;;  %s1678_s13 = smov 15   ;;  %s1679_s25 = smov 1   ;;  %v1684_v30 = vmov 0.0   ;;  %vm362_vm3 = vcmask 121856  }
  0x4b   : > { %s1680_s9 = smov 127   ;;  %s1681_s10 = smov 113   ;;  %v290_v22 = vand.u32 127, %v289_v21  ;;  %vm374_vm5 = vcmask 1043456   ;;  %vm385_vm8 = vcmask 7168   ;;  %vm416_vm9 = vcmask 97280  }
  0x4c   : > { %s1682_s24 = smov 111   ;;  %s1683_s29 = smov 112   ;;  %v377_v55 = vld [vmem:[#allocation5] sm:$0xf]  ;;  %vm399_vm10 = vcmask 1039360   ;;  %vm547_vm11 = vcmask 908288  }
  0x4d   : > { %v296_v23 = vand.u32 15, %v290_v22  ;;  %v291_v27 = vadd.s32 128, %v290_v22  ;;  %vm522_vm12 = vcmask 924672   ;;  %vm536_vm13 = vcmask 916480   ;;  %s1689_s30 = smov 4   ;;  %s1690_s6 = smov 3  }
  0x4e   : > { %vm664_vm15 = vcmask 3072   ;;  %s1692_s7 = smov 2   ;;  %s1345_s26 = sshll.u32 %s1742_s22, 3 }
  0x4f   : > { %vm316_vm2 = vcmp.ge.s32.totalorder %v296_v23, 1  ;;  %vm322_vm4 = vcmp.le.s32.totalorder %v296_v23, 14  ;;  %v303_v34 = vand.u32 15, %v291_v27  ;;  %v562_v23 = vld [vmem:[#allocation5 + $0x8] sm:$0xf]  ;;  %s1178_s1 = scalar_lea.hbm %s2144_s4, %s1345_s26  ;;  %s287_s23 = scalar_lea.vmem [#allocation10], %s1306_s14 }
  0x50   : > { %v1884_v31 = vsel %vm316_vm2, 1.0, %v1684_v30  ;;  %v1888_v38 = vsel %vm322_vm4, 1.0, %v1684_v30  ;;  %s1182_s22 = sshll.u32 %s1178_s1, 4  ;;  %s1616_s14 = scalar_lea.hbm %s2144_s4, 16  ;;  %s1183_s22 = int_to_ptr.hbm [resolvable:$true] %s1182_s22 }
  0x51   : > { %v331_v1 = vld.sshfl [vmem:[#allocation1] sm:$0xff pattern:$0x75316420]  ;;  %v332_v2 = vld.sshfl [vmem:[#allocation1 + $0x8] sm:$0xff pattern:$0x75316420] }
  0x52   : > { %344 = vst [vmem:[#allocation1] ss:$2 sm:$0xff] %v328_v0  ;;  %333 = vrot.lane.b32.xlu2 %v331_v1, %s1676_s21  ;;  %vm317_vm6 = vcmp.ge.s32.totalorder %v303_v34, 1  ;;  %vm323_vm7 = vcmp.le.s32.totalorder %v303_v34, 14 }
  0x53   : > { %v1895_v45 = vsel %vm317_vm6, 1.0, %v1684_v30  ;;  %v1899_v50 = vsel %vm323_vm7, 1.0, %v1684_v30 }
  0x59   : > { %v345_v3 = vld.sshfl [vmem:[#allocation1] sm:$0xff pattern:$0x75316420]  ;;  %v346_v4 = vld.sshfl [vmem:[#allocation1 + $0x8] sm:$0xff pattern:$0x75316420] }
  0x5a   : > { %355 = vst [vmem:[#allocation1] ss:$2 sm:$0xff] %v328_v0  ;;  %v1437_v5 = vpack.i.bf16 %v346_v4, %v345_v3  ;;  %335 = vrot.lane.b32.xlu2 %v332_v2, %s1676_s21  ;;  %v415_v3 = vld [vmem:[#allocation5 + $0x4] sm:$0xf] }
  0x5c   : > { %1438 = vrot.lane.b32.xlu0 %v1437_v5, %s1677_s12 }
  0x61   : > { %v356_v6 = vld.sshfl [vmem:[#allocation1] sm:$0xff pattern:$0x75316420]  ;;  %v357_v7 = vld.sshfl [vmem:[#allocation1 + $0x8] sm:$0xff pattern:$0x75316420] }
  0x62   : > { %378 = vst [vmem:[#allocation1] ss:$2 sm:$0xff] %v328_v0 }
  0x64   : > { %358 = vrot.lane.b32.xlu0 %v356_v6, %s1678_s13 }
  0x69   : > { %v379_v8 = vld.sshfl [vmem:[#allocation1] sm:$0xff pattern:$0x75316420]  ;;  %v380_v9 = vld.sshfl [vmem:[#allocation1 + $0x8] sm:$0xff pattern:$0x75316420] }
  0x6a   : > { %381 = vrot.lane.b32.xlu1 %v379_v8, %s1679_s25  ;;  %392 = vst [vmem:[#allocation1] ss:$2 sm:$0xff] %v328_v0  ;;  %383 = vrot.lane.b32.xlu2 %v380_v9, %s1679_s25 }
  0x6c   : > { %360 = vrot.lane.b32.xlu0 %v357_v7, %s1678_s13 }
  0x71   : > { %v393_v10 = vld.sshfl [vmem:[#allocation1] sm:$0xff pattern:$0x75316420]  ;;  %v394_v11 = vld.sshfl [vmem:[#allocation1 + $0x8] sm:$0xff pattern:$0x75316420] }
  0x72   : > { %395 = vrot.lane.b32.xlu1 %v393_v10, %s1680_s9  ;;  %407 = vst [vmem:[#allocation1 + $0x1] ss:$2 sm:$0xff] %v328_v0 }
  0x79   : > { %v1872_v12 = vld.sshfl [vmem:[#allocation1] sm:$0xff pattern:$0x75316420]  ;;  %v1874_v13 = vld.sshfl [vmem:[#allocation1 + $0x8] sm:$0xff pattern:$0x75316420] }
  0x7a   : > { %397 = vrot.lane.b32.xlu1 %v394_v11, %s1680_s9  ;;  %515 = vst [vmem:[#allocation1] ss:$2 sm:$0xff] %v328_v0 }
  0x81   : > { %v516_v14 = vld.sshfl [vmem:[#allocation1] sm:$0xff pattern:$0x75316420]  ;;  %v517_v15 = vld.sshfl [vmem:[#allocation1 + $0x8] sm:$0xff pattern:$0x75316420] }
  0x82   : > { %529 = vst [vmem:[#allocation1] ss:$2 sm:$0xff] %v328_v0  ;;  %518 = vrot.lane.b32.xlu2 %v516_v14, %s1681_s10 }
  0x89   : > { %v530_v16 = vld.sshfl [vmem:[#allocation1] sm:$0xff pattern:$0x75316420]  ;;  %v531_v17 = vld.sshfl [vmem:[#allocation1 + $0x8] sm:$0xff pattern:$0x75316420] }
  0x8a   : > { %540 = vst [vmem:[#allocation1] ss:$2 sm:$0xff] %v328_v0  ;;  %v1442_v20 = vpack.i.bf16 %v531_v17, %v530_v16 }
  0x91   : > { %v542_v18 = vld.sshfl [vmem:[#allocation1 + $0x8] sm:$0xff pattern:$0x75316420]  ;;  %v541_v19 = vld.sshfl [vmem:[#allocation1] sm:$0xff pattern:$0x75316420] }
  0x92   : > { %545 = vrot.lane.b32.xlu1 %v542_v18, %s1682_s24  ;;  %543 = vrot.lane.b32.xlu0 %v541_v19, %s1682_s24  ;;  %1153 = vst [vmem:[#allocation1] ss:$2 sm:$0xff] %v328_v0 }
  0x9a   : > { %1443 = vrot.lane.b32.xlu1 %v1442_v20, %s1683_s29  ;;  %520 = vrot.lane.b32.xlu0 %v517_v15, %s1681_s10 }
  0xac   : > { %v334_v25 = vpop.permute.xlu2 %333 }
  0xad   : > { %v341_v28 = vsel %vm337_vm0, 0.0, %v334_v25 }
  0xae   : > { %v342_v32 = vmul.f32 %v1884_v31, %v341_v28 }
  0xb4   : > { %v336_v40 = vpop.permute.xlu2 %335 }
  0xb5   : > { %v338_v42 = vsel %vm337_vm0, %v334_v25, %v336_v40 }
  0xb6   : > { %v343_v46 = vmul.f32 %v1895_v45, %v338_v42 }
  0xc4   : > { %v384_v54 = vpop.permute.xlu2 %383 }
  0xce   : > { %v1439_v24 = vpop.permute.xlu0 %1438 }
  0xcf   : > { %v1440_v26 = vunpack.i.l.bf16 %v1439_v24  ;;  %v1441_v35 = vunpack.i.h.bf16 %v1439_v24 }
  0xd1   : > { %v354_v29 = vsel %vm351_vm1, 0.0, %v1440_v26  ;;  %v352_v43 = vsel %vm351_vm1, %v1440_v26, %v1441_v35 }
  0xd2   : > { %v370_v33 = vrot.slane %v354_v29, 4  ;;  %v371_v47 = vrot.slane %v352_v43, 4 }
  0xd4   : > { %v375_v41 = vsel %vm374_vm5, %v342_v32, %v370_v33  ;;  %v376_v52 = vsel %vm374_vm5, %v343_v46, %v371_v47  ;;  %v1685_v47 = vmov 256.0  }
  0xd5   : > { %1460 = vrcp.f32 %v1685_v47 }
  0xd6   : > { %v359_v36 = vpop.permute.xlu0 %358 }
  0xd7   : > { %v366_v37 = vsel %vm362_vm3, 0.0, %v359_v36 }
  0xd8   : > { %v367_v39 = vmul.f32 %v1888_v38, %v366_v37 }
  0xda   : > { %1319 = vmatpush.msk.msra.mxu2 %vm374_vm5, %v367_v39 }
  0xdc   : > { %v382_v44 = vpop.permute.xlu1 %381  ;;  %490 = vmatpush.msra.mxu2 %v375_v41  ;;  %v519_v10 = vpop.permute.xlu2 %518 }
  0xdd   : > { %1320 = vmatmul.msk.f32.vlgmr.msra.gmra.mxu2 %vm416_vm9, %v377_v55  ;;  %v389_v56 = vsel %vm385_vm8, 0.0, %v382_v44  ;;  %v386_v57 = vsel %vm385_vm8, %v382_v44, %v384_v54  ;;  %v1687_v54 = vmov 1024.0  }
  0xde   : > { %v361_v48 = vpop.permute.xlu0 %360  ;;  %v390_v58 = vmul.f32 %v1884_v31, %v389_v56  ;;  %v391_v59 = vmul.f32 %v1895_v45, %v386_v57  ;;  %v1688_v57 = vmov 1023.0  }
  0xdf   : > { %v363_v49 = vsel %vm362_vm3, %v359_v36, %v361_v48  ;;  %v1461_v48 = vpop.eup %1460 }
  0xe0   : > { %v368_v51 = vmul.f32 %v1899_v50, %v363_v49  ;;  %v412_v1 = vsel %vm374_vm5, %v390_v58, %v1872_v12  ;;  %v413_v2 = vsel %vm374_vm5, %v391_v59, %v1874_v13  ;;  %v1686_v49 = vmov 255.0   ;;  %v1953_v59 = vld [vmem:[%s1858_s5] sm:$0xf]  ;;  %s1180_s5 = sshll.u32 %s287_s23, 4  ;;  %s1181_s5 = int_to_ptr.vmem [resolvable:$true] %s1180_s5 }
  0xe1   : > { %1462 = vrcp.f32 %v1686_v49  ;;  %vm638_vm14 = vweird.f32 %v1461_v48 }
  0xe2   : > { %1321 = vmatpush.msk.msra.mxu3 %vm374_vm5, %v368_v51  ;;  %v634_v51 = vmul.f32 256.0, %v1461_v48  ;;  %1464 = vrcp.f32 %v1687_v54 }
  0xe3   : > { %1466 = vrcp.f32 %v1688_v57 }
  0xe4   : > { %v396_v53 = vpop.permute.xlu1 %395  ;;  %510 = vmatpush.msra.mxu3 %v376_v52 }
  0xe5   : > { %1322 = vmatmul.msk.f32.vlgmr.msra.gmra.mxu3 %vm416_vm9, %v377_v55 }
  0xe7   : > { %v1463_v52 = vpop.eup %1462 }
  0xe8   : > { %v645_v55 = vmul.f32 255.0, %v1463_v52  ;;  %v1465_v58 = vpop.eup %1464  ;;  %vm649_vm2 = vweird.f32 %v1463_v52 }
  0xe9   : > { %vm684_vm4 = vweird.f32 %v1465_v58 }
  0xec   : > { %v398_v60 = vpop.permute.xlu1 %397 }
  0xed   : > { %v400_v61 = vsel %vm399_vm10, %v396_v53, %v398_v60  ;;  %v403_v62 = vsel %vm399_vm10, %v398_v60, 0.0  ;;  %v635_v53 = vsub.f32 1.0, %v634_v51  ;;  %v646_v60 = vsub.f32 1.0, %v645_v55 }
  0xee   : > { %v404_v63 = vmul.f32 %v1888_v38, %v400_v61  ;;  %v405_v0 = vmul.f32 %v1899_v50, %v403_v62  ;;  %v1956_v62 = vmul.f32 256.0, %v1953_v59 }
  0xef   : > { %v636_v56 = vmul.f32 %v1461_v48, %v635_v53 }
  0xf0   : > { %1315 = vmatpush.msk.msra.mxu0 %vm374_vm5, %v404_v63  ;;  %1317 = vmatpush.msk.msra.mxu1 %vm374_vm5, %v405_v0  ;;  %v1959_v63 = vmul.f32 2.0, %v1953_v59  ;;  %v680_v0 = vmul.f32 1024.0, %v1465_v58 }
  0xf1   : > { %v637_v61 = vadd.f32 %v1461_v48, %v636_v56 }
  0xf2   : > { %441 = vmatpush.msra.mxu0 %v412_v1  ;;  %461 = vmatpush.msra.mxu1 %v413_v2  ;;  %v647_v1 = vmul.f32 %v1463_v52, %v646_v60  ;;  %v1467_v2 = vpop.eup %1466 }
  0xf3   : > { %1318 = vmatmul.msk.f32.vlgmr.msra.gmra.mxu1 %vm416_vm9, %v415_v3  ;;  %1316 = vmatmul.msk.f32.vlgmr.msra.gmra.mxu0 %vm416_vm9, %v415_v3  ;;  %vm695_vm6 = vweird.f32 %v1467_v2 }
 0x104   : > { %v546_v4 = vpop.permute.xlu1 %545  ;;  %v544_v5 = vpop.permute.xlu0 %543 }
 0x105   : > { %v551_v6 = vsel %vm547_vm11, %v546_v4, 0.0  ;;  %v548_v7 = vsel %vm547_vm11, %v544_v5, %v546_v4  ;;  %v1961_v4 = vsel %vm638_vm14, %v1461_v48, %v637_v61 }
 0x106   : > { %v553_v8 = vmul.f32 %v1899_v50, %v551_v6  ;;  %v552_v9 = vmul.f32 %v1888_v38, %v548_v7  ;;  %v1967_v7 = vmul.f32 %v1956_v62, %v1953_v59 }
 0x108   : > { %1323 = vmatpush.msk.msrb.mxu0 %vm374_vm5, %v552_v9  ;;  %1325 = vmatpush.msk.msrb.mxu1 %vm374_vm5, %v553_v8  ;;  %v681_v8 = vsub.f32 1.0, %v680_v0  ;;  %v648_v9 = vadd.f32 %v1463_v52, %v647_v1 }
 0x10c   : > { %v1444_v11 = vpop.permute.xlu1 %1443  ;;  %v521_v12 = vpop.permute.xlu0 %520 }
 0x10d   : > { %v1446_v13 = vunpack.i.h.bf16 %v1444_v11  ;;  %v1445_v14 = vunpack.i.l.bf16 %v1444_v11  ;;  %v523_v15 = vsel %vm522_vm12, %v519_v10, %v521_v12  ;;  %v526_v16 = vsel %vm522_vm12, %v521_v12, 0.0 }
 0x10e   : > { %v527_v17 = vmul.f32 %v1884_v31, %v523_v15  ;;  %v528_v18 = vmul.f32 %v1895_v45, %v526_v16  ;;  %v691_v11 = vmul.f32 1023.0, %v1467_v2 }
 0x10f   : > { %v539_v19 = vsel %vm536_vm13, %v1446_v13, 0.0  ;;  %v537_v20 = vsel %vm536_vm13, %v1445_v14, %v1446_v13 }
 0x110   : > { %v556_v21 = vrot.slane %v539_v19, 4  ;;  %v555_v22 = vrot.slane %v537_v20, 4  ;;  %v682_v19 = vmul.f32 %v1465_v58, %v681_v8  ;;  %v1974_v20 = vsel %vm649_vm2, %v1463_v52, %v648_v9 }
 0x112   : > { %v559_v24 = vsel %vm374_vm5, %v527_v17, %v555_v22  ;;  %v560_v25 = vsel %vm374_vm5, %v528_v18, %v556_v21 }
 0x113   : > { %587 = vmatpush.msrb.mxu0 %v559_v24  ;;  %607 = vmatpush.msrb.mxu1 %v560_v25  ;;  %v692_v24 = vsub.f32 1.0, %v691_v11 }
 0x114   : > { %1324 = vmatmul.msk.f32.vlgmr.msrb.gmra.mxu0 %vm416_vm9, %v562_v23  ;;  %1326 = vmatmul.msk.f32.vlgmr.msrb.gmra.mxu1 %vm416_vm9, %v562_v23 }
 0x160   : > { %v492_v28 = vpop.f32.mrf.mxu2 }
 0x168   : > { %v512_v29 = vpop.f32.mrf.mxu3 }
 0x170   : > { %v443_v26 = vpop.f32.mrf.mxu0  ;;  %v463_v27 = vpop.f32.mrf.mxu1 }
 0x171   : > { %v493_v30 = vadd.f32 %v492_v28, %v443_v26  ;;  %v513_v32 = vadd.f32 %v512_v29, %v463_v27  ;;  %v683_v28 = vadd.f32 %v1465_v58, %v682_v19 }
 0x191   : > { %v589_v33 = vpop.f32.mrf.mxu0  ;;  %v609_v34 = vpop.f32.mrf.mxu1 }
 0x192   : > { %v1938_v35 = vadd.f32 %v589_v33, %v493_v30  ;;  %v1940_v36 = vadd.f32 %v609_v34, %v513_v32  ;;  %v693_v33 = vmul.f32 %v1467_v2, %v692_v24 }
 0x194   : > { %v614_v37 = vsel %vm374_vm5, %v1938_v35, 0.0  ;;  %v615_v39 = vsel %vm374_vm5, %v1940_v36, 0.0  ;;  %v619_v40 = vmul.f32 %v1938_v35, %v1938_v35  ;;  %v620_v41 = vmul.f32 %v1940_v36, %v1940_v36 }
 0x195   : > { %v616_v42 = vadd.f32 %v615_v39, %v614_v37 }
 0x196   : > { %v621_v43 = vsel %vm374_vm5, %v619_v40, 0.0  ;;  %v622_v44 = vsel %vm374_vm5, %v620_v41, 0.0  ;;  %v1978_v40 = vsel %vm684_vm4, %v1465_v58, %v683_v28 }
 0x197   : > { %617 = vadd.xlane.f32.xlu2 %v616_v42  ;;  %v623_v46 = vadd.f32 %v622_v44, %v621_v43  ;;  %v694_v43 = vadd.f32 %v1467_v2, %v693_v33 }
 0x199   : > { %624 = vadd.xlane.f32.xlu0 %v623_v46  ;;  %v1983_v51 = vsel %vm695_vm6, %v1467_v2, %v694_v43 }
 0x1ad   : > { %751 = vrot.lane.b32.xlu0 %v1953_v59, %s1689_s30 }
 0x20a   : > { %v618_v3 = vpop.xlane.xlu2 %617 }
 0x20b   : > { %v627_v5 = vadd.f32 %v1956_v62, %v618_v3  ;;  %v629_v6 = vmul.f32 %v1959_v63, %v618_v3 }
 0x20c   : > { %v625_v10 = vpop.xlane.xlu0 %624 }
 0x20d   : > { %v641_v12 = vmul.f32 %v627_v5, %v627_v5  ;;  %v630_v13 = vadd.f32 %v629_v6, %v625_v10  ;;  %v665_v14 = vsel %vm664_vm15, %v627_v5, 0.0  ;;  %v640_v15 = vmul.f32 %v1961_v4, %v627_v5 }
 0x20e   : > { %v666_v16 = vrot.slane %v665_v14, 4 }
 0x20f   : > { %v632_v17 = vadd.f32 %v1967_v7, %v630_v13  ;;  %v642_v18 = vmul.f32 %v641_v12, %v1961_v4  ;;  %728 = vrot.lane.b32.xlu1 %v640_v15, %s1679_s25 }
 0x210   : > { %v667_v21 = vadd.f32 %v666_v16, %v665_v14  ;;  %v1990_v14 = vsub.f32 1.0, %v1953_v59 }
 0x211   : > { %v643_v22 = vsub.f32 %v632_v17, %v642_v18  ;;  %v672_v23 = vsel %vm664_vm15, %v632_v17, 0.0 }
 0x212   : > { %v668_v25 = vrot.slane %v667_v21, 2  ;;  %v673_v26 = vrot.slane %v672_v23, 4 }
 0x213   : > { %v651_v27 = vmul.f32 %v1974_v20, %v643_v22 }
 0x214   : > { %v674_v29 = vadd.f32 %v673_v26, %v672_v23  ;;  %v669_v30 = vadd.f32 %v668_v25, %v667_v21 }
 0x215   : > { %v652_v32 = vmax.f32 %v651_v27, 0.0  ;;  %v1691_v27 = vmov 4  }
 0x216   : > { %v675_v34 = vrot.slane %v674_v29, 2  ;;  %v670_v37 = vrot.slane %v669_v30, 1  ;;  %1447 = vset.pattern.permute.xlu1 %v1691_v27  ;;  %1448 = vset.pattern.permute.xlu2 %v1691_v27 }
 0x217   : > { %v653_v39 = vadd.f32 1e-05, %v652_v32  ;;  %1459 = vset.pattern.permute.xlu0 %v1691_v27 }
 0x218   : > { %v676_v41 = vadd.f32 %v675_v34, %v674_v29  ;;  %v671_v42 = vadd.f32 %v670_v37, %v669_v30 }
 0x219   : > { %1468 = vrsqrt.f32 %v653_v39  ;;  %vm660_vm14 = vweird.f32 %v653_v39 }
 0x21a   : > { %v677_v44 = vrot.slane %v676_v41, 1  ;;  %v686_v46 = vmul.f32 %v1978_v40, %v671_v42  ;;  %v687_v47 = vmul.f32 %v671_v42, %v671_v42 }
 0x21c   : > { %v678_v48 = vadd.f32 %v677_v44, %v676_v41  ;;  %v688_v49 = vmul.f32 %v687_v47, %v1978_v40  ;;  %734 = vrot.lane.b32.xlu1 %v686_v46, %s1679_s25 }
 0x21e   : > { %v689_v52 = vsub.f32 %v678_v48, %v688_v49 }
 0x21f   : > { %v1469_v53 = vpop.eup %1468  ;;  %v752_v33 = vpop.permute.xlu0 %751 }
 0x220   : > { %v655_v54 = vmul.f32 %v1469_v53, %v653_v39  ;;  %v697_v55 = vmul.f32 %v1983_v51, %v689_v52  ;;  %vm661_vm7 = vweird.f32 %v1469_v53 }
 0x221   : > { %vm662_vm15 = vmor %vm660_vm14, %vm661_vm7 }
 0x222   : > { %v656_v56 = vmul.f32 %v1469_v53, %v655_v54  ;;  %v698_v57 = vmax.f32 %v697_v55, 0.0 }
 0x224   : > { %v657_v58 = vmul.f32 0.5, %v656_v56  ;;  %v699_v60 = vadd.f32 1e-05, %v698_v57 }
 0x226   : > { %v658_v61 = vsub.f32 1.5, %v657_v58  ;;  %1470 = vrsqrt.f32 %v699_v60  ;;  %vm706_vm4 = vweird.f32 %v699_v60 }
 0x228   : > { %v659_v0 = vmul.f32 %v1469_v53, %v658_v61 }
 0x22a   : > { %v663_v1 = vsel %vm662_vm15, %v1469_v53, %v659_v0 }
 0x22b   : > { %711 = vrot.lane.b32.xlu1 %v663_v1, %s1679_s25  ;;  %v840_v1 = vld [vmem:[#allocation7 + $0x4] sm:$0xf] }
 0x22c   : > { %v1471_v2 = vpop.eup %1470 }
 0x22d   : > { %v701_v3 = vmul.f32 %v1471_v2, %v699_v60  ;;  %vm707_vm2 = vweird.f32 %v1471_v2 }
 0x22e   : > { %vm708_vm6 = vmor %vm706_vm4, %vm707_vm2 }
 0x22f   : > { %v702_v5 = vmul.f32 %v1471_v2, %v701_v3 }
 0x231   : > { %v703_v6 = vmul.f32 0.5, %v702_v5 }
 0x233   : > { %v704_v8 = vsub.f32 1.5, %v703_v6 }
 0x235   : > { %v705_v9 = vmul.f32 %v1471_v2, %v704_v8 }
 0x237   : > { %v709_v10 = vsel %vm708_vm6, %v1471_v2, %v705_v9 }
 0x238   : > { %717 = vrot.lane.b32.xlu1 %v709_v10, %s1679_s25 }
 0x281   : > { %v729_v11 = vpop.permute.xlu1 %728 }
 0x282   : > { %v731_v15 = vmul.f32 %v729_v11, %v1953_v59 }
 0x28e   : > { %v735_v12 = vpop.permute.xlu1 %734 }
 0x28f   : > { %v737_v16 = vmul.f32 %v735_v12, %v1990_v14 }
 0x29d   : > { %v712_v13 = vpop.permute.xlu1 %711 }
 0x29e   : > { %v732_v18 = vmul.f32 %v731_v15, %v712_v13  ;;  %v714_v23 = vmul.f32 %v712_v13, %v1953_v59 }
 0x2aa   : > { %v718_v17 = vpop.permute.xlu1 %717 }
 0x2ab   : > { %v738_v19 = vmul.f32 %v737_v16, %v718_v17  ;;  %v720_v22 = vmul.f32 %v718_v17, %v1990_v14 }
 0x2ad   : > { %v739_v21 = vadd.f32 %v738_v19, %v732_v18  ;;  %v721_v24 = vadd.f32 %v720_v22, %v714_v23 }
 0x2af   : > { %741 = vrot.lane.b32.xlu1 %v739_v21, %s1690_s6 }
 0x2b7   : > { %723 = vrot.lane.b32.xlu1 %v721_v24, %s1690_s6 }
 0x321   : > { %v742_v25 = vpop.permute.xlu1 %741 }
 0x322   : > { %v744_v26 = vmul.f32 %v742_v25, %v1953_v59 }
 0x324   : > { %746 = vrot.lane.b32.xlu2 %v744_v26, %s1679_s25 }
 0x329   : > { %v724_v30 = vpop.permute.xlu1 %723 }
 0x32a   : > { %v726_v32 = vmul.f32 %v724_v30, %v1953_v59 }
 0x32c   : > { %v754_v34 = vmul.f32 %v752_v33, %v726_v32 }
 0x37e   : > { %v747_v28 = vpop.permute.xlu2 %746 }
 0x37f   : > { %v749_v29 = vsub.f32 %v1953_v59, %v747_v28 }
 0x381   : > { %756 = vrot.lane.b32.xlu1 %v749_v29, %s1680_s9 }
 0x389   : > { %762 = vperm.xlu1 %1447, %v726_v32   ;;  %v974_v32 = vld [vmem:[#allocation7 + $0x8] sm:$0xf] }
 0x3f3   : > { %v757_v37 = vpop.permute.xlu1 %756 }
 0x3f4   : > { %v759_v39 = vadd.f32 %v757_v37, %v754_v34 }
 0x3f6   : > { %769 = vperm.xlu2 %1448, %v759_v39  }
 0x3fb   : > { %v763_v41 = vpop.permute.xlu1 %762 }
 0x3fc   : > { %v765_v42 = vmul.f32 %v763_v41, %v1938_v35  ;;  %v766_v43 = vmul.f32 %v763_v41, %v1940_v36 }
 0x450   : > { %v770_v44 = vpop.permute.xlu2 %769 }
 0x451   : > { %v772_v46 = vadd.f32 %v770_v44, %v765_v42  ;;  %v773_v47 = vadd.f32 %v770_v44, %v766_v43 }
 0x453   : > { %v774_v48 = vmax.f32 %v772_v46, 0.0  ;;  %v775_v49 = vmax.f32 %v773_v47, 0.0 }
 0x455   : > { %825 = vrot.lane.b32.xlu1 %v775_v49, %s1680_s9  ;;  %813 = vrot.lane.b32.xlu2 %v774_v48, %s1679_s25  ;;  %v1449_v35 = vpack.i.bf16 %v775_v49, %v774_v48  ;;  %v833_v0 = vrot.slane %v774_v48, 4  ;;  %v834_v15 = vrot.slane %v775_v49, 4 }
 0x456   : > { %823 = vrot.lane.b32.xlu0 %v774_v48, %s1680_s9 }
 0x45d   : > { %956 = vrot.lane.b32.xlu1 %v774_v48, %s1682_s24  ;;  %958 = vrot.lane.b32.xlu2 %v775_v49, %s1682_s24 }
 0x45e   : > { %815 = vrot.lane.b32.xlu0 %v775_v49, %s1679_s25 }
 0x465   : > { %941 = vrot.lane.b32.xlu1 %v775_v49, %s1681_s10  ;;  %1450 = vrot.lane.b32.xlu2 %v1449_v35, %s1683_s29 }
 0x466   : > { %939 = vrot.lane.b32.xlu0 %v774_v48, %s1681_s10 }
 0x46d   : > { %797 = vrot.lane.b32.xlu1 %v775_v49, %s1678_s13  ;;  %778 = vrot.lane.b32.xlu2 %v774_v48, %s1676_s21 }
 0x46e   : > { %795 = vrot.lane.b32.xlu0 %v774_v48, %s1678_s13 }
 0x475   : > { %1455 = vrot.lane.b32.xlu1 %v1449_v35, %s1677_s12  ;;  %s1610_s12 = sshra.s32 %s1183_s22, 4  ;;  %s1611_s12 = int_to_ptr.hbm [resolvable:$true] %s1610_s12 }
 0x476   : > { %780 = vrot.lane.b32.xlu0 %v775_v49, %s1676_s21  ;;  %s1167_s21 = scalar_lea.sflag [#allocation4], %s1842_s2  ;;  %s1612_s13 = scalar_lea.hbm %s1611_s12, 8 }
 0x477   : > { %p1613_p1 = scmp.ne.s32.totalorder %s1611_s12, %s1612_s13  ;;  %p1617_p7 = scmp.lt.s32.totalorder %s1611_s12, %s2144_s4 }
 0x478   : > { %p1618_p9 = scmp.lt.s32.totalorder %s1616_s14, %s1612_s13 }
 0x479   : > { %p1614_p3 = pnand %p1613_p1, %p1789_p4 }
 0x47a   : > { %p1619_p5 = por %p1618_p9, %p1617_p7 }
 0x47b   : > { %p1615_p12 = pneg %p1614_p3 }
 0x47d   : > { %p1620_p8 = pnand %p1619_p5, %p1615_p12 }
 0x4af   : > { %v814_v36 = vpop.permute.xlu2 %813 }
 0x4b0   : > { %v820_v53 = vsel %vm385_vm8, 0.0, %v814_v36 }
 0x4b1   : > { %v821_v57 = vmul.f32 %v1884_v31, %v820_v53 }
 0x4b3   : > { %v837_v2 = vsel %vm374_vm5, %v821_v57, %v833_v0 }
 0x4b7   : > { %v959_v52 = vpop.permute.xlu2 %958 }
 0x4b8   : > { %v963_v9 = vsel %vm547_vm11, %v959_v52, 0.0 }
 0x4b9   : > { %v965_v17 = vmul.f32 %v1899_v50, %v963_v9 }
 0x4bf   : > { %v1451_v3 = vpop.permute.xlu2 %1450 }
 0x4c0   : > { %v1453_v12 = vunpack.i.h.bf16 %v1451_v3  ;;  %v1452_v16 = vunpack.i.l.bf16 %v1451_v3 }
 0x4c2   : > { %v955_v19 = vsel %vm536_vm13, %v1453_v12, 0.0  ;;  %v953_v21 = vsel %vm536_vm13, %v1452_v16, %v1453_v12 }
 0x4c3   : > { %v968_v25 = vrot.slane %v955_v19, 4  ;;  %v967_v29 = vrot.slane %v953_v21, 4 }
 0x4c7   : > { %v826_v54 = vpop.permute.xlu1 %825  ;;  %v779_v44 = vpop.permute.xlu2 %778 }
 0x4c8   : > { %v830_v55 = vsel %vm399_vm10, %v826_v54, 0.0  ;;  %v824_v56 = vpop.permute.xlu0 %823  ;;  %v785_v47 = vsel %vm337_vm0, 0.0, %v779_v44 }
 0x4c9   : > { %v832_v58 = vmul.f32 %v1899_v50, %v830_v55  ;;  %v827_v60 = vsel %vm399_vm10, %v824_v56, %v826_v54  ;;  %v812_v56 = vld [vmem:[#allocation7] sm:$0xf] }
 0x4ca   : > { %v831_v61 = vmul.f32 %v1888_v38, %v827_v60 }
 0x4cb   : > { %1329 = vmatpush.msk.msrb.mxu3 %vm374_vm5, %v832_v58 }
 0x4cc   : > { %1327 = vmatpush.msk.msrb.mxu2 %vm374_vm5, %v831_v61 }
 0x4ce   : > { %865 = vmatpush.msrb.mxu2 %v837_v2 }
 0x4cf   : > { %v957_v5 = vpop.permute.xlu1 %956  ;;  %1328 = vmatmul.msk.f32.vlgmr.msrb.gmra.mxu2 %vm416_vm9, %v840_v1 }
 0x4d0   : > { %v960_v6 = vsel %vm547_vm11, %v957_v5, %v959_v52  ;;  %v816_v8 = vpop.permute.xlu0 %815 }
 0x4d1   : > { %v964_v10 = vmul.f32 %v1888_v38, %v960_v6  ;;  %v817_v11 = vsel %vm385_vm8, %v814_v36, %v816_v8 }
 0x4d2   : > { %v822_v13 = vmul.f32 %v1895_v45, %v817_v11 }
 0x4d3   : > { %1335 = vmatpush.msk.msra.mxu2 %vm374_vm5, %v964_v10 }
 0x4d4   : > { %v838_v18 = vsel %vm374_vm5, %v822_v13, %v834_v15 }
 0x4d5   : > { %885 = vmatpush.msrb.mxu3 %v838_v18 }
 0x4d6   : > { %1330 = vmatmul.msk.f32.vlgmr.msrb.gmra.mxu3 %vm416_vm9, %v840_v1 }
 0x4d7   : > { %1337 = vmatpush.msk.msra.mxu3 %vm374_vm5, %v965_v17  ;;  %v942_v22 = vpop.permute.xlu1 %941 }
 0x4d8   : > { %v946_v23 = vsel %vm522_vm12, %v942_v22, 0.0  ;;  %v940_v24 = vpop.permute.xlu0 %939 }
 0x4d9   : > { %v948_v26 = vmul.f32 %v1895_v45, %v946_v23  ;;  %v943_v27 = vsel %vm522_vm12, %v940_v24, %v942_v22 }
 0x4da   : > { %v947_v28 = vmul.f32 %v1884_v31, %v943_v27 }
 0x4db   : > { %v972_v30 = vsel %vm374_vm5, %v948_v26, %v968_v25 }
 0x4dc   : > { %v971_v33 = vsel %vm374_vm5, %v947_v28, %v967_v29  ;;  %1019 = vmatpush.msra.mxu3 %v972_v30 }
 0x4dd   : > { %999 = vmatpush.msra.mxu2 %v971_v33 }
 0x4de   : > { %1336 = vmatmul.msk.f32.vlgmr.msra.gmra.mxu2 %vm416_vm9, %v974_v32  ;;  %1338 = vmatmul.msk.f32.vlgmr.msra.gmra.mxu3 %vm416_vm9, %v974_v32 }
 0x4df   : > { %v798_v34 = vpop.permute.xlu1 %797 }
 0x4e0   : > { %v796_v37 = vpop.permute.xlu0 %795 }
 0x4e1   : > { %v799_v39 = vsel %vm362_vm3, %v796_v37, %v798_v34  ;;  %v802_v41 = vsel %vm362_vm3, 0.0, %v796_v37 }
 0x4e2   : > { %v803_v42 = vmul.f32 %v1888_v38, %v802_v41  ;;  %v804_v43 = vmul.f32 %v1899_v50, %v799_v39  ;;  %v786_v38 = vmul.f32 %v1884_v31, %v785_v47 }
 0x4e4   : > { %1331 = vmatpush.msk.msra.mxu0 %vm374_vm5, %v803_v42  ;;  %1333 = vmatpush.msk.msra.mxu1 %vm374_vm5, %v804_v43 }
 0x4e7   : > { %v1456_v46 = vpop.permute.xlu1 %1455 }
 0x4e8   : > { %v1458_v48 = vunpack.i.h.bf16 %v1456_v46  ;;  %v1457_v49 = vunpack.i.l.bf16 %v1456_v46  ;;  %v781_v35 = vpop.permute.xlu0 %780 }
 0x4e9   : > { %v782_v36 = vsel %vm337_vm0, %v779_v44, %v781_v35  ;;  %vm1059_vm0 = vcmask 19472  }
 0x4ea   : > { %v792_v52 = vsel %vm351_vm1, %v1457_v49, %v1458_v48  ;;  %v794_v53 = vsel %vm351_vm1, 0.0, %v1457_v49  ;;  %v787_v54 = vmul.f32 %v1895_v45, %v782_v36 }
 0x4eb   : > { %v806_v50 = vrot.slane %v794_v53, 4  ;;  %v807_v55 = vrot.slane %v792_v52, 4 }
 0x4ed   : > { %v810_v57 = vsel %vm374_vm5, %v786_v38, %v806_v50  ;;  %v811_v58 = vsel %vm374_vm5, %v787_v54, %v807_v55 }
 0x4ee   : > { %914 = vmatpush.msra.mxu0 %v810_v57  ;;  %934 = vmatpush.msra.mxu1 %v811_v58 }
 0x4ef   : > { %1332 = vmatmul.msk.f32.vlgmr.msra.gmra.mxu0 %vm416_vm9, %v812_v56  ;;  %1334 = vmatmul.msk.f32.vlgmr.msra.gmra.mxu1 %vm416_vm9, %v812_v56 }
 0x552   : > { %v867_v60 = vpop.f32.mrf.mxu2 }
 0x559   : > { %v887_v61 = vpop.f32.mrf.mxu3 }
 0x561   : > { %v1001_v0 = vpop.f32.mrf.mxu2  ;;  %v1021_v1 = vpop.f32.mrf.mxu3 }
 0x56c   : > { %v916_v31 = vpop.f32.mrf.mxu0  ;;  %v936_v2 = vpop.f32.mrf.mxu1 }
 0x56d   : > { %v917_v3 = vadd.f32 %v916_v31, %v867_v60  ;;  %v937_v45 = vadd.f32 %v936_v2, %v887_v61 }
 0x56f   : > { %v2063_v5 = vadd.f32 %v1001_v0, %v917_v3  ;;  %v2065_v6 = vadd.f32 %v1021_v1, %v937_v45 }
 0x571   : > { %v1026_v8 = vsel %vm374_vm5, %v2063_v5, 0.0  ;;  %v1027_v9 = vsel %vm374_vm5, %v2065_v6, 0.0  ;;  %v1031_v10 = vmul.f32 %v2063_v5, %v2063_v5  ;;  %v1032_v11 = vmul.f32 %v2065_v6, %v2065_v6 }
 0x572   : > { %v1028_v12 = vadd.f32 %v1027_v9, %v1026_v8 }
 0x573   : > { %v1033_v13 = vsel %vm374_vm5, %v1031_v10, 0.0  ;;  %v1034_v15 = vsel %vm374_vm5, %v1032_v11, 0.0 }
 0x574   : > { %1029 = vadd.xlane.f32.xlu2 %v1028_v12  ;;  %v1035_v16 = vadd.f32 %v1034_v15, %v1033_v13 }
 0x576   : > { %1036 = vadd.xlane.f32.xlu0 %v1035_v16 }
 0x5e7   : > { %v1030_v17 = vpop.xlane.xlu2 %1029 }
 0x5e8   : > { %v1038_v18 = vadd.f32 %v1030_v17, %v1956_v62  ;;  %v1039_v19 = vmul.f32 %v1030_v17, %v1959_v63 }
 0x5e9   : > { %v1037_v21 = vpop.xlane.xlu0 %1036 }
 0x5ea   : > { %v1043_v22 = vmul.f32 %v1038_v18, %v1038_v18  ;;  %v1040_v23 = vadd.f32 %v1039_v19, %v1037_v21  ;;  %v1060_v24 = vsel %vm1059_vm0, %v1038_v18, 0.0  ;;  %v1042_v25 = vmul.f32 %v1038_v18, %v1961_v4 }
 0x5eb   : > { %v1061_v26 = vrot.slane %v1060_v24, 4 }
 0x5ec   : > { %v1041_v27 = vadd.f32 %v1040_v23, %v1967_v7  ;;  %v1044_v28 = vmul.f32 %v1043_v22, %v1961_v4  ;;  %1108 = vrot.lane.b32.xlu1 %v1042_v25, %s1679_s25 }
 0x5ed   : > { %v1062_v29 = vadd.f32 %v1061_v26, %v1060_v24 }
 0x5ee   : > { %v1045_v30 = vsub.f32 %v1041_v27, %v1044_v28  ;;  %v1067_v32 = vsel %vm1059_vm0, %v1041_v27, 0.0 }
 0x5ef   : > { %v1063_v33 = vrot.slane %v1062_v29, 2  ;;  %v1068_v62 = vrot.slane %v1067_v32, 4 }
 0x5f0   : > { %v1046_v63 = vmul.f32 %v1045_v30, %v1974_v20  ;;  %v1155_v30 = vld.sshfl [vmem:[#allocation1 + $0x8] sm:$0xff pattern:$0x75316420] }
 0x5f1   : > { %v1069_v34 = vadd.f32 %v1068_v62, %v1067_v32  ;;  %v1064_v37 = vadd.f32 %v1063_v33, %v1062_v29  ;;  %v1154_v62 = vld.sshfl [vmem:[#allocation1] sm:$0xff pattern:$0x75316420] }
 0x5f2   : > { %v1047_v39 = vmax.f32 %v1046_v63, 0.0 }
 0x5f3   : > { %v1070_v41 = vrot.slane %v1069_v34, 2  ;;  %v1065_v42 = vrot.slane %v1064_v37, 1 }
 0x5f4   : > { %v1048_v43 = vadd.f32 1e-05, %v1047_v39 }
 0x5f5   : > { %v1071_v44 = vadd.f32 %v1070_v41, %v1069_v34  ;;  %v1066_v46 = vadd.f32 %v1065_v42, %v1064_v37 }
 0x5f6   : > { %1472 = vrsqrt.f32 %v1048_v43  ;;  %vm1055_vm3 = vweird.f32 %v1048_v43 }
 0x5f7   : > { %v1072_v7 = vrot.slane %v1071_v44, 1  ;;  %v1074_v4 = vmul.f32 %v1066_v46, %v1978_v40  ;;  %v1075_v47 = vmul.f32 %v1066_v46, %v1066_v46 }
 0x5f9   : > { %v1073_v48 = vadd.f32 %v1072_v7, %v1071_v44  ;;  %v1076_v49 = vmul.f32 %v1075_v47, %v1978_v40  ;;  %1114 = vrot.lane.b32.xlu1 %v1074_v4, %s1679_s25 }
 0x5fb   : > { %v1077_v35 = vsub.f32 %v1073_v48, %v1076_v49 }
 0x5fc   : > { %v1473_v20 = vpop.eup %1472 }
 0x5fd   : > { %v1050_v36 = vmul.f32 %v1473_v20, %v1048_v43  ;;  %v1078_v52 = vmul.f32 %v1077_v35, %v1983_v51  ;;  %vm1056_vm1 = vweird.f32 %v1473_v20 }
 0x5fe   : > { %vm1057_vm8 = vmor %vm1055_vm3, %vm1056_vm1 }
 0x5ff   : > { %v1051_v53 = vmul.f32 %v1473_v20, %v1050_v36  ;;  %v1079_v38 = vmax.f32 %v1078_v52, 0.0 }
 0x601   : > { %v1052_v50 = vmul.f32 0.5, %v1051_v53  ;;  %v1080_v54 = vadd.f32 1e-05, %v1079_v38 }
 0x603   : > { %v1053_v55 = vsub.f32 1.5, %v1052_v50  ;;  %1474 = vrsqrt.f32 %v1080_v54  ;;  %vm1087_vm10 = vweird.f32 %v1080_v54 }
 0x605   : > { %v1054_v56 = vmul.f32 %v1473_v20, %v1053_v55 }
 0x607   : > { %v1058_v57 = vsel %vm1057_vm8, %v1473_v20, %v1054_v56 }
 0x608   : > { %1092 = vrot.lane.b32.xlu1 %v1058_v57, %s1679_s25 }
 0x609   : > { %v1475_v40 = vpop.eup %1474 }
 0x60a   : > { %v1082_v58 = vmul.f32 %v1475_v40, %v1080_v54  ;;  %vm1088_vm9 = vweird.f32 %v1475_v40 }
 0x60b   : > { %vm1089_vm11 = vmor %vm1087_vm10, %vm1088_vm9 }
 0x60c   : > { %v1083_v60 = vmul.f32 %v1475_v40, %v1082_v58 }
 0x60e   : > { %v1084_v61 = vmul.f32 0.5, %v1083_v60 }
 0x610   : > { %v1085_v0 = vsub.f32 1.5, %v1084_v61 }
 0x612   : > { %v1086_v51 = vmul.f32 %v1475_v40, %v1085_v0 }
 0x614   : > { %v1090_v1 = vsel %vm1089_vm11, %v1475_v40, %v1086_v51 }
 0x615   : > { %1097 = vrot.lane.b32.xlu1 %v1090_v1, %s1679_s25 }
 0x65e   : > { %v1109_v31 = vpop.permute.xlu1 %1108 }
 0x65f   : > { %v1111_v45 = vmul.f32 %v1109_v31, %v1953_v59 }
 0x66b   : > { %v1115_v2 = vpop.permute.xlu1 %1114 }
 0x66c   : > { %v1117_v8 = vmul.f32 %v1115_v2, %v1990_v14 }
 0x67a   : > { %v1093_v3 = vpop.permute.xlu1 %1092 }
 0x67b   : > { %v1095_v10 = vmul.f32 %v1093_v3, %v1953_v59  ;;  %v1112_v11 = vmul.f32 %v1111_v45, %v1093_v3 }
 0x687   : > { %v1098_v9 = vpop.permute.xlu1 %1097 }
 0x688   : > { %v1100_v12 = vmul.f32 %v1098_v9, %v1990_v14  ;;  %v1118_v13 = vmul.f32 %v1117_v8, %v1098_v9 }
 0x68a   : > { %v1101_v15 = vadd.f32 %v1100_v12, %v1095_v10  ;;  %v1119_v16 = vadd.f32 %v1118_v13, %v1112_v11 }
 0x68c   : > { %1103 = vrot.lane.b32.xlu0 %v1101_v15, %s1679_s25  ;;  %1121 = vrot.lane.b32.xlu1 %v1119_v16, %s1679_s25 }
 0x694   : > { %1130 = vrot.lane.b32.xlu1 %v1953_v59, %s1692_s7 }
 0x6fe   : > { %v1122_v17 = vpop.permute.xlu1 %1121  ;;  %v1104_v14 = vpop.permute.xlu0 %1103 }
 0x6ff   : > { %v1124_v18 = vmul.f32 %v1122_v17, %v1953_v59  ;;  %v1106_v22 = vmul.f32 %v1104_v14, %v1953_v59 }
 0x701   : > { %1126 = vrot.lane.b32.xlu2 %v1124_v18, %s1679_s25 }
 0x706   : > { %v1131_v23 = vpop.permute.xlu1 %1130 }
 0x707   : > { %v1133_v24 = vmul.f32 %v1131_v23, %v1106_v22 }
 0x75b   : > { %v1127_v19 = vpop.permute.xlu2 %1126 }
 0x75c   : > { %v1129_v21 = vsub.f32 %v1953_v59, %v1127_v19 }
 0x75e   : > { %1135 = vrot.lane.b32.xlu1 %v1129_v21, %s1680_s9 }
 0x766   : > { %1141 = vperm.xlu1 %1447, %v1106_v22  }
 0x7d0   : > { %v1136_v25 = vpop.permute.xlu1 %1135 }
 0x7d1   : > { %v1138_v26 = vadd.f32 %v1136_v25, %v1133_v24 }
 0x7d3   : > { %1148 = vperm.xlu2 %1448, %v1138_v26  }
 0x7d8   : > { %v1142_v27 = vpop.permute.xlu1 %1141 }
 0x7d9   : > { %v1144_v28 = vmul.f32 %v1142_v27, %v2063_v5  ;;  %v1145_v29 = vmul.f32 %v1142_v27, %v2065_v6 }
 0x82d   : > { %v1149_v32 = vpop.permute.xlu2 %1148 }
 0x82e   : > { %v1151_v59 = vadd.f32 %v1149_v32, %v1144_v28  ;;  %v1152_v33 = vadd.f32 %v1149_v32, %v1145_v29 }
 0x830   : > { %v1159_v63 = vadd.f32 %v1155_v30, %v1152_v33  ;;  %v1158_v34 = vadd.f32 %v1154_v62, %v1151_v59 }
 0x832   : > { %v1162_v5 = vrot.slane %v1159_v63, 4 }
 0x834   : > { %v1163_v6 = vsel %vm374_vm5, %v1158_v34, %v1162_v5 }
 0x835   : > { %1165 = vst [vmem:[%s287_s23] sm:$0xff] %v1163_v6 }
 0x836   : > { %1623 = shalt.err (!%p1620_p8)
}
 0x837   : > { %1358 = dma.vmem_to_hbm [thread:$0]  (%p1789_p4), %s1181_s5, 128, %s1183_s22, %s1167_s21  }
 0x838 PF: > { %s1194_s2 = sand.u32 1, %s1658_s15   ;;  %p2155_p10 = scmp.ge.s32.totalorder %s1670_s18, 2 }
 0x839   : > { %s1195_s29 = scalar_lea.sflag [#allocation4], %s1194_s2 }
 0x83a   : > { %p1375_p13 = pnand %p2155_p10, %p1793_p6 }
 0x83c   : > { %p1376_p11 = pneg %p1375_p13 }
 0x83e   : > { %1653 = dma.done.wait (%p1376_p11), %s1195_s29, 128  }
 0x83f   : > { %1655 = vsyncadd (%p1376_p11), %s1195_s29, 4294967168  ;;  %p21_p0 = scmp.ge.s32.totalorder %s1761_s8, 4   ;;  %s2156_s15 = smov %s1662_s16 }
 0x840   : > { %s2157_s16 = smov %s1666_s17  ;;  %s2158_s17 = smov %s1772_s11 }
 0x841   : > { %s2159_s18 = smov %s1761_s8  ;;  %23 = sbr.rel (!%p21_p0) target bundleno = 11 (0xb), region = 107 }
 0x846   :  { %1201 = vsyncpa [#allocation3], 1 }
 0x847   :  { %1203 = vsyncpa [#allocation3 + $0x1], 1 }
 0x848   :  { %1204 = vsyncpa [#allocation6], 1 }
 0x849   :  { %1205 = vsyncpa [#allocation9], 1 }
 0x84a   :  { %1207 = vsyncpa [#allocation9 + $0x1], 1 }
 0x84b   :  { %1208 = vsyncpa [#allocation4], 1 }
 0x84c   :  { %1210 = vsyncpa [#allocation4 + $0x1], 1 }

</bundles_post_ra>
